<compile_context>
chip_gen: v5e
topology: v5e:2x2
jax: 0.10.0
libtpu: 0.0.40
codegen_flags: <defaults>
</compile_context>

<pallas_src>
import jax
import jax.numpy as jnp
from jax.experimental import pallas as pl
from jax.experimental.pallas import tpu as pltpu

HIDDEN = 512          # SE block / head input dim (input_dim=512 in the module)
NUM_CLASSES = 7
PADDED_CLASSES = 128  # minimum lane-dense output width


def _round_up(n, m):
    return ((n + m - 1) // m) * m


def _cdiv(a, b):
    return (a + b - 1) // b


def _choose_tiling(B, tm_max):
    """Pick (tm, steps, Bp) such that:
       - tm is a multiple of 8 (sublane constraint) and <= tm_max,
       - tiles split B near-evenly (minimal padded-row waste),
       - steps >= 2 whenever B allows (v7x dual-TensorCore sharding)."""
    rows = _round_up(max(B, 8), 8)
    steps = _cdiv(rows, tm_max)
    if steps == 1 and rows >= 16:
        steps = 2                       # make both v7x TCs do work
    tm = _round_up(_cdiv(rows, steps), 8)
    steps = _cdiv(rows, tm)
    return tm, steps, tm * steps


def nlfer_head_kernel(x_ref, w1_ref, b1_ref, w2_ref, b2_ref, wh_ref, bh_ref,
                      feat_ref, out_ref):
    """Fused SE_block + ClassificationHead on one (TM, 512) batch tile.

    g    = sigmoid(relu(x @ W1 + b1) @ W2 + b2)
    feat = x * g                      (stored bf16)
    out  = feat @ Wh + bh             (classes padded to 128 lanes, stored bf16)
    """
    x = x_ref[...]                                  # (TM, 512), f32 or bf16
    x_f32 = x.astype(jnp.float32)
    x_bf = x.astype(jnp.bfloat16)

    # SE_block: linear1 -> relu   (bf16 operands, f32 accumulation on MXU)
    h = jnp.dot(x_bf, w1_ref[...], preferred_element_type=jnp.float32) + b1_ref[...]
    h = jnp.maximum(h, 0.0)

    # SE_block: linear2 -> sigmoid. Single EUP transcendental per element:
    #   sigmoid(z) = 0.5 * tanh(0.5 * z) + 0.5   (exact)
    z = jnp.dot(h.astype(jnp.bfloat16), w2_ref[...],
                preferred_element_type=jnp.float32) + b2_ref[...]
    g = 0.5 * jnp.tanh(0.5 * z) + 0.5

    # Channel re-weighting (f32 math, bf16 store to halve HBM writeback).
    feat_bf = (x_f32 * g).astype(jnp.bfloat16)
    feat_ref[...] = feat_bf

    # ClassificationHead (padded to 128 output lanes, bf16 store).
    out_ref[...] = (jnp.dot(feat_bf, wh_ref[...],
                            preferred_element_type=jnp.float32)
                    + bh_ref[...]).astype(out_ref.dtype)


def nlfer_head(feat_in, w1, b1, w2, b2, wh, bh, *, tm_max=1024):
    """feat_in: (B, 512), f32 or bf16 (bf16 preferred if the producer can emit it).
    Weights w1/w2/wh: bf16, (in, out) layout. Biases f32.

    Returns (logits (B, 7) f32, y_feat (B, 512) bf16).
    """
    B, D = feat_in.shape
    assert D == HIDDEN

    tm, steps, Bp = _choose_tiling(B, tm_max)
    if Bp != B:
        feat_in = jnp.pad(feat_in, ((0, Bp - B), (0, 0)))
    grid = (steps,)

    # x / feat / logits are tiled over batch; weights & biases stay resident
    # (constant index_map -> fetched once, kept in VMEM across grid steps).
    x_spec = pl.BlockSpec((tm, HIDDEN), lambda i: (i, 0))
    w_spec = pl.BlockSpec((HIDDEN, HIDDEN), lambda i: (0, 0))
    b_spec = pl.BlockSpec((1, HIDDEN), lambda i: (0, 0))
    wh_spec = pl.BlockSpec((HIDDEN, PADDED_CLASSES), lambda i: (0, 0))
    bh_spec = pl.BlockSpec((1, PADDED_CLASSES), lambda i: (0, 0))
    feat_spec = pl.BlockSpec((tm, HIDDEN), lambda i: (i, 0))
    out_spec = pl.BlockSpec((tm, PADDED_CLASSES), lambda i: (i, 0))

    x_itemsize = jnp.dtype(feat_in.dtype).itemsize
    weight_bytes = (2 * HIDDEN * HIDDEN * 2 + HIDDEN * PADDED_CLASSES * 2
                    + 2 * HIDDEN * 4 + PADDED_CLASSES * 4)
    act_bytes = Bp * (HIDDEN * x_itemsize          # x read
                      + HIDDEN * 2                 # feat write (bf16)
                      + PADDED_CLASSES * 2)        # logits write (bf16)
    cost = pl.CostEstimate(
        flops=2 * Bp * HIDDEN * (HIDDEN + HIDDEN + PADDED_CLASSES),
        transcendentals=Bp * HIDDEN,
        bytes_accessed=weight_bytes + act_bytes,
    )

    # Explicit VMEM budget: double-buffered activation tiles + (conservatively
    # double-buffered) resident weights + headroom. Clamped to a range that is
    # safe on every generation (v5e 16 MiB default scoped, v7x 64 MiB physical).
    act_tile_bytes = tm * (HIDDEN * x_itemsize + HIDDEN * 2 + PADDED_CLASSES * 2)
    vmem_limit = 2 * act_tile_bytes + 2 * weight_bytes + (4 << 20)
    vmem_limit = min(max(vmem_limit, 16 << 20), 48 << 20)

    y_feat, out_pad = pl.pallas_call(
        nlfer_head_kernel,
        out_shape=(
            jax.ShapeDtypeStruct((Bp, HIDDEN), jnp.bfloat16),           # y_feat
            jax.ShapeDtypeStruct((Bp, PADDED_CLASSES), jnp.bfloat16),   # padded logits
        ),
        grid_spec=pltpu.PrefetchScalarGridSpec(
            num_scalar_prefetch=0,
            grid=grid,
            in_specs=[x_spec, w_spec, b_spec, w_spec, b_spec, wh_spec, bh_spec],
            out_specs=[feat_spec, out_spec],
        ),
        compiler_params=pltpu.CompilerParams(
            dimension_semantics=("parallel",),
            vmem_limit_bytes=vmem_limit),
        cost_estimate=cost,
    )(feat_in, w1, b1, w2, b2, wh, bh)

    logits = out_pad[:B, :NUM_CLASSES].astype(jnp.float32)  # tiny (B,7) upcast
    return logits, y_feat[:B]


def init_params(key):
    """Deterministic parameter init (uniform, PyTorch-Linear-like bounds)."""
    ks = jax.random.split(key, 6)
    bound = 1.0 / jnp.sqrt(HIDDEN)
    # SE_block linears: (in, out) layout = transpose of torch weight (out, in).
    # Weights stored as bf16 (f32 accumulation inside the kernel).
    w1 = jax.random.uniform(ks[0], (HIDDEN, HIDDEN), jnp.float32, -bound, bound)
    b1 = jax.random.uniform(ks[1], (1, HIDDEN), jnp.float32, -bound, bound)
    w2 = jax.random.uniform(ks[2], (HIDDEN, HIDDEN), jnp.float32, -bound, bound)
    b2 = jax.random.uniform(ks[3], (1, HIDDEN), jnp.float32, -bound, bound)
    # Classification head, padded from 7 -> 128 output columns with zeros.
    wh_real = jax.random.uniform(ks[4], (HIDDEN, NUM_CLASSES), jnp.float32, -bound, bound)
    bh_real = jax.random.uniform(ks[5], (1, NUM_CLASSES), jnp.float32, -bound, bound)
    wh = jnp.zeros((HIDDEN, PADDED_CLASSES), jnp.float32).at[:, :NUM_CLASSES].set(wh_real)
    bh = jnp.zeros((1, PADDED_CLASSES), jnp.float32).at[:, :NUM_CLASSES].set(bh_real)
    return (w1.astype(jnp.bfloat16), b1, w2.astype(jnp.bfloat16), b2,
            wh.astype(jnp.bfloat16), bh)


def reference(feat_in, w1, b1, w2, b2, wh, bh):
    """Pure-JAX reference mirroring the kernel's bf16-operand / f32-accum math
    (exact sigmoid; kernel's tanh formulation is mathematically identical)."""
    x = feat_in.astype(jnp.float32)
    h = jnp.maximum(
        jnp.dot(x.astype(jnp.bfloat16), w1, preferred_element_type=jnp.float32) + b1, 0.0)
    z = jnp.dot(h.astype(jnp.bfloat16), w2, preferred_element_type=jnp.float32) + b2
    g = jax.nn.sigmoid(z)
    y = x * g
    out = jnp.dot(y.astype(jnp.bfloat16), wh, preferred_element_type=jnp.float32) + bh
    return out[:, :NUM_CLASSES], y


if __name__ == "__main__":
    key = jax.random.PRNGKey(0)
    k_feat, k_params = jax.random.split(key)
    params = init_params(k_params)

    # B=2: single-tile path; B=300: multi-step grid + even-split tiling path.
    for B in (2, 300):
        kf = jax.random.fold_in(k_feat, B)
        # Stand-in for the fused (ResNet + MobileFaceNet + ViT) 512-d feature.
        feat_in = jax.random.normal(kf, (B, HIDDEN), jnp.float32)

        logits, y_feat = jax.block_until_ready(nlfer_head(feat_in, *params))
        ref_logits, ref_feat = reference(feat_in, *params)

        assert logits.shape == (B, NUM_CLASSES) and logits.dtype == jnp.float32
        assert y_feat.shape == (B, HIDDEN)
        # bf16 operands / bf16 feat & logits stores -> slightly looser tolerance.
        assert jnp.allclose(logits, ref_logits, atol=2e-2, rtol=2e-2)
        assert jnp.allclose(y_feat.astype(jnp.float32), ref_feat, atol=2e-2, rtol=2e-2)

    print("KERNEL_OK")
</pallas_src>

<mosaic_0001>
module attributes {stable_mosaic.version = 11 : i64} {
  func.func @nlfer_head_kernel(%arg0: i32, %arg1: memref<8x512xf32, #tpu.memory_space<vmem>>, %arg2: memref<512x512xbf16, #tpu.memory_space<vmem>>, %arg3: memref<1x512xf32, #tpu.memory_space<vmem>>, %arg4: memref<512x512xbf16, #tpu.memory_space<vmem>>, %arg5: memref<1x512xf32, #tpu.memory_space<vmem>>, %arg6: memref<512x128xbf16, #tpu.memory_space<vmem>>, %arg7: memref<1x128xf32, #tpu.memory_space<vmem>>, %arg8: memref<8x512xbf16, #tpu.memory_space<vmem>>, %arg9: memref<8x128xbf16, #tpu.memory_space<vmem>>) attributes {dimension_semantics = [#tpu.dimension_semantics<parallel>], iteration_bounds = array<i64: 1>, scalar_prefetch = 0 : i64, scratch_operands = 0 : i64, tpu.core_type = #tpu.core_type<tc>, window_params = [{transform_indices = @transform_0, window_bounds = array<i64: 8, 512>}, {pipeline_mode = #tpu.pipeline_mode<synchronous>, transform_indices = @transform_1, window_bounds = array<i64: 512, 512>}, {pipeline_mode = #tpu.pipeline_mode<synchronous>, transform_indices = @transform_2, window_bounds = array<i64: 1, 512>}, {pipeline_mode = #tpu.pipeline_mode<synchronous>, transform_indices = @transform_3, window_bounds = array<i64: 512, 512>}, {pipeline_mode = #tpu.pipeline_mode<synchronous>, transform_indices = @transform_4, window_bounds = array<i64: 1, 512>}, {pipeline_mode = #tpu.pipeline_mode<synchronous>, transform_indices = @transform_5, window_bounds = array<i64: 512, 128>}, {pipeline_mode = #tpu.pipeline_mode<synchronous>, transform_indices = @transform_6, window_bounds = array<i64: 1, 128>}, {transform_indices = @transform_7, window_bounds = array<i64: 8, 512>}, {transform_indices = @transform_8, window_bounds = array<i64: 8, 128>}]} {
    %c0 = arith.constant 0 : index
    %c0_0 = arith.constant 0 : index
    %0 = vector.load %arg1[%c0, %c0_0] : memref<8x512xf32, #tpu.memory_space<vmem>>, vector<8x512xf32>
    %1 = arith.truncf %0 : vector<8x512xf32> to vector<8x512xbf16>
    %c0_1 = arith.constant 0 : index
    %c0_2 = arith.constant 0 : index
    %2 = vector.load %arg2[%c0_1, %c0_2] : memref<512x512xbf16, #tpu.memory_space<vmem>>, vector<512x512xbf16>
    %cst = arith.constant dense<0.000000e+00> : vector<8x512xf32>
    %3 = tpu.matmul %1, %2, %cst {dimension_numbers = #tpu.dot_dimension_numbers<[1], [0], [0], [1], [0, 0, 1, 1], [], []>} : vector<8x512xbf16>, vector<512x512xbf16>, vector<8x512xf32> -> vector<8x512xf32>
    %c0_3 = arith.constant 0 : index
    %c0_4 = arith.constant 0 : index
    %4 = vector.load %arg3[%c0_3, %c0_4] : memref<1x512xf32, #tpu.memory_space<vmem>>, vector<1x512xf32>
    %5 = vector.broadcast %4 : vector<1x512xf32> to vector<8x512xf32>
    %6 = arith.addf %3, %5 : vector<8x512xf32>
    %cst_5 = arith.constant 0.000000e+00 : f32
    %7 = vector.broadcast %cst_5 : f32 to vector<8x512xf32>
    %8 = arith.maximumf %6, %7 : vector<8x512xf32>
    %9 = arith.truncf %8 : vector<8x512xf32> to vector<8x512xbf16>
    %c0_6 = arith.constant 0 : index
    %c0_7 = arith.constant 0 : index
    %10 = vector.load %arg4[%c0_6, %c0_7] : memref<512x512xbf16, #tpu.memory_space<vmem>>, vector<512x512xbf16>
    %cst_8 = arith.constant dense<0.000000e+00> : vector<8x512xf32>
    %11 = tpu.matmul %9, %10, %cst_8 {dimension_numbers = #tpu.dot_dimension_numbers<[1], [0], [0], [1], [0, 0, 1, 1], [], []>} : vector<8x512xbf16>, vector<512x512xbf16>, vector<8x512xf32> -> vector<8x512xf32>
    %c0_9 = arith.constant 0 : index
    %c0_10 = arith.constant 0 : index
    %12 = vector.load %arg5[%c0_9, %c0_10] : memref<1x512xf32, #tpu.memory_space<vmem>>, vector<1x512xf32>
    %13 = vector.broadcast %12 : vector<1x512xf32> to vector<8x512xf32>
    %14 = arith.addf %11, %13 : vector<8x512xf32>
    %cst_11 = arith.constant 5.000000e-01 : f32
    %15 = vector.broadcast %cst_11 : f32 to vector<8x512xf32>
    %16 = arith.mulf %15, %14 : vector<8x512xf32>
    %17 = math.tanh %16 : vector<8x512xf32>
    %cst_12 = arith.constant 5.000000e-01 : f32
    %18 = vector.broadcast %cst_12 : f32 to vector<8x512xf32>
    %19 = arith.mulf %18, %17 : vector<8x512xf32>
    %cst_13 = arith.constant 5.000000e-01 : f32
    %20 = vector.broadcast %cst_13 : f32 to vector<8x512xf32>
    %21 = arith.addf %19, %20 : vector<8x512xf32>
    %22 = arith.mulf %0, %21 : vector<8x512xf32>
    %23 = arith.truncf %22 : vector<8x512xf32> to vector<8x512xbf16>
    %c0_14 = arith.constant 0 : index
    %c0_15 = arith.constant 0 : index
    %24 = vector.load %arg8[%c0_14, %c0_15] : memref<8x512xbf16, #tpu.memory_space<vmem>>, vector<8x512xbf16>
    tpu.vector_store %arg8[%c0_14, %c0_15], %23 {strides = array<i32>} : memref<8x512xbf16, #tpu.memory_space<vmem>>, vector<8x512xbf16>,
    %c0_16 = arith.constant 0 : index
    %c0_17 = arith.constant 0 : index
    %25 = vector.load %arg6[%c0_16, %c0_17] : memref<512x128xbf16, #tpu.memory_space<vmem>>, vector<512x128xbf16>
    %cst_18 = arith.constant dense<0.000000e+00> : vector<8x128xf32>
    %26 = tpu.matmul %23, %25, %cst_18 {dimension_numbers = #tpu.dot_dimension_numbers<[1], [0], [0], [1], [0, 0, 1, 1], [], []>} : vector<8x512xbf16>, vector<512x128xbf16>, vector<8x128xf32> -> vector<8x128xf32>
    %c0_19 = arith.constant 0 : index
    %c0_20 = arith.constant 0 : index
    %27 = vector.load %arg7[%c0_19, %c0_20] : memref<1x128xf32, #tpu.memory_space<vmem>>, vector<1x128xf32>
    %28 = vector.broadcast %27 : vector<1x128xf32> to vector<8x128xf32>
    %29 = arith.addf %26, %28 : vector<8x128xf32>
    %30 = arith.truncf %29 : vector<8x128xf32> to vector<8x128xbf16>
    %c0_21 = arith.constant 0 : index
    %c0_22 = arith.constant 0 : index
    %31 = vector.load %arg9[%c0_21, %c0_22] : memref<8x128xbf16, #tpu.memory_space<vmem>>, vector<8x128xbf16>
    tpu.vector_store %arg9[%c0_21, %c0_22], %30 {strides = array<i32>} : memref<8x128xbf16, #tpu.memory_space<vmem>>, vector<8x128xbf16>,
    return
  }
  func.func @transform_0(%arg0: i32) -> (i32, i32) {
    %c0_i32 = arith.constant 0 : i32
    %c0_i32_0 = arith.constant 0 : i32
    return %arg0, %c0_i32 : i32, i32
  }
  func.func @transform_1(%arg0: i32) -> (i32, i32) {
    %c0_i32 = arith.constant 0 : i32
    %c0_i32_0 = arith.constant 0 : i32
    %c0_i32_1 = arith.constant 0 : i32
    return %c0_i32, %c0_i32_0 : i32, i32
  }
  func.func @transform_2(%arg0: i32) -> (i32, i32) {
    %c0_i32 = arith.constant 0 : i32
    %c0_i32_0 = arith.constant 0 : i32
    %c0_i32_1 = arith.constant 0 : i32
    return %c0_i32, %c0_i32_0 : i32, i32
  }
  func.func @transform_3(%arg0: i32) -> (i32, i32) {
    %c0_i32 = arith.constant 0 : i32
    %c0_i32_0 = arith.constant 0 : i32
    %c0_i32_1 = arith.constant 0 : i32
    return %c0_i32, %c0_i32_0 : i32, i32
  }
  func.func @transform_4(%arg0: i32) -> (i32, i32) {
    %c0_i32 = arith.constant 0 : i32
    %c0_i32_0 = arith.constant 0 : i32
    %c0_i32_1 = arith.constant 0 : i32
    return %c0_i32, %c0_i32_0 : i32, i32
  }
  func.func @transform_5(%arg0: i32) -> (i32, i32) {
    %c0_i32 = arith.constant 0 : i32
    %c0_i32_0 = arith.constant 0 : i32
    %c0_i32_1 = arith.constant 0 : i32
    return %c0_i32, %c0_i32_0 : i32, i32
  }
  func.func @transform_6(%arg0: i32) -> (i32, i32) {
    %c0_i32 = arith.constant 0 : i32
    %c0_i32_0 = arith.constant 0 : i32
    %c0_i32_1 = arith.constant 0 : i32
    return %c0_i32, %c0_i32_0 : i32, i32
  }
  func.func @transform_7(%arg0: i32) -> (i32, i32) {
    %c0_i32 = arith.constant 0 : i32
    %c0_i32_0 = arith.constant 0 : i32
    return %arg0, %c0_i32 : i32, i32
  }
  func.func @transform_8(%arg0: i32) -> (i32, i32) {
    %c0_i32 = arith.constant 0 : i32
    %c0_i32_0 = arith.constant 0 : i32
    return %arg0, %c0_i32 : i32, i32
  }
}

</mosaic_0001>

<bundles_post_ra>
// kernel: tpu_custom_call.1
= control target key start
LH: loop header
LB: loop body
LE: loop exit
PB: predicated region body
PF: predicated region fallthrough
CT: control target
= control target key end

     0   :  { %14 = vsyncpa [#allocation3], 0  ;;  %s4322_s0 = inlined_call_operand.hbm [shape: f32[8,512], index: 0, kind: input, shape index: {}]   ;;  %s4323_s1 = inlined_call_operand.hbm [shape: bf16[512,512], index: 1, kind: input, shape index: {}]   ;;  %s4324_s2 = inlined_call_operand.hbm [shape: f32[1,512], index: 2, kind: input, shape index: {}]   ;;  %s4325_s3 = inlined_call_operand.hbm [shape: bf16[512,512], index: 3, kind: input, shape index: {}]   ;;  %s4326_s4 = inlined_call_operand.hbm [shape: f32[1,512], index: 4, kind: input, shape index: {}]   ;;  %s4327_s5 = inlined_call_operand.hbm [shape: bf16[512,128], index: 5, kind: input, shape index: {}]   ;;  %s4328_s6 = inlined_call_operand.vmem [shape: f32[1,128], index: 6, kind: input, shape index: {}]   ;;  %s4329_s7 = inlined_call_operand.hbm [shape: bf16[8,512], index: 7, kind: output, shape index: {0}]   ;;  %s4330_s8 = inlined_call_operand.hbm [shape: bf16[8,128], index: 8, kind: output, shape index: {1}]  }
   0x1   :  { %15 = vsyncpa [#allocation6], 0 }
   0x2   :  { %16 = vsyncpa [#allocation9], 0 }
   0x3   :  { %17 = vsyncpa [#allocation12], 0 }
   0x4   :  { %18 = vsyncpa [#allocation4], 0  ;;  %s35_s29 = sshll.u32 %s4323_s1, 4  ;;  %s36_s29 = int_to_ptr.hbm [resolvable:$true] %s35_s29 }
   0x5   :  { %19 = vsyncpa [#allocation15], 0  ;;  %s4163_s30 = smov [#allocation5]   ;;  %s59_s12 = sshll.u32 %s4325_s3, 4  ;;  %s60_s12 = int_to_ptr.hbm [resolvable:$true] %s59_s12 }
   0x6   :  { %s37_s9 = sshll.u32 %s4163_s30, 4  ;;  %s4164_s13 = smov 256   ;;  %s38_s9 = int_to_ptr.vmem [resolvable:$true] %s37_s9 }
   0x7   :  { %s4165_s14 = smov 16   ;;  %s4166_s15 = smov [#allocation8]  }
   0x8   :  { %43 = dma.hbm_to_vmem [thread:$0]  %s36_s29, 16384, %s38_s9, [#allocation6], %s4164_s13, %s4164_s13, %s4165_s14  }
   0x9   :  { %s61_s16 = sshll.u32 %s4166_s15, 4  ;;  %s25_s19 = sshll.u32 %s4322_s0, 4  ;;  %s62_s16 = int_to_ptr.vmem [resolvable:$true] %s61_s16  ;;  %s26_s19 = int_to_ptr.hbm [resolvable:$true] %s25_s19 }
   0xa   :  { %67 = dma.hbm_to_vmem [thread:$0]  %s60_s12, 16384, %s62_s16, [#allocation9], %s4164_s13, %s4164_s13, %s4165_s14  }
   0xb   :  { %s49_s21 = sshll.u32 %s4324_s2, 4  ;;  %s4167_s22 = smov [#allocation2]   ;;  %s50_s21 = int_to_ptr.hbm [resolvable:$true] %s49_s21 }
   0xc   :  { %s27_s23 = sshll.u32 %s4167_s22, 4  ;;  %s4168_s3 = smov [#allocation7]   ;;  %s28_s23 = int_to_ptr.vmem [resolvable:$true] %s27_s23 }
   0xd   :  { %30 = dma.hbm_to_vmem [thread:$0]  %s26_s19, 512, %s28_s23, [#allocation3]  }
   0xe   :  { %s51_s24 = sshll.u32 %s4168_s3, 4  ;;  %s73_s27 = sshll.u32 %s4326_s4, 4  ;;  %s52_s24 = int_to_ptr.vmem [resolvable:$true] %s51_s24  ;;  %s74_s27 = int_to_ptr.hbm [resolvable:$true] %s73_s27 }
   0xf   :  { %54 = dma.hbm_to_vmem [thread:$0]  %s50_s21, 64, %s52_s24, [#allocation6]  }
  0x10   :  { %s83_s29 = sshll.u32 %s4327_s5, 4  ;;  %s4169_s30 = smov [#allocation10]   ;;  %s84_s29 = int_to_ptr.hbm [resolvable:$true] %s83_s29 }
  0x11   :  { %s75_s2 = sshll.u32 %s4169_s30, 4  ;;  %s4170_s9 = smov [#allocation11]   ;;  %s76_s2 = int_to_ptr.vmem [resolvable:$true] %s75_s2 }
  0x12   :  { %78 = dma.hbm_to_vmem [thread:$0]  %s74_s27, 64, %s76_s2, [#allocation9]  }
  0x13   :  { %s85_s10 = sshll.u32 %s4170_s9, 4  ;;  %s4171_s11 = smov 64   ;;  %s86_s10 = int_to_ptr.vmem [resolvable:$true] %s85_s10 }
  0x14   :  { %s4172_s12 = smov 4  }
  0x15   :  { %91 = dma.hbm_to_vmem [thread:$0]  %s84_s29, 4096, %s86_s10, [#allocation12], %s4171_s11, %s4171_s11, %s4172_s12  }
  0x16   :  { %4151 = dma.done.wait [#allocation3], 512  }
  0x17   :  { %4152 = vsyncadd [#allocation3], 4294966784 }
  0x18   :  { %4153 = dma.done.wait [#allocation6], 16448  }
  0x19   :  { %4154 = vsyncadd [#allocation6], 4294950848 }
  0x1a   :  { %4155 = dma.done.wait [#allocation9], 16448  }
  0x1b   :  { %4156 = vsyncadd [#allocation9], 4294950848 }
  0x1c   :  { %4157 = dma.done.wait [#allocation12], 4096  }
  0x1d   :  { %4158 = vsyncadd [#allocation12], 4294963200  ;;  %v2608_v0 = vld [vmem:[#allocation5 + $0xe0] sm:$0xf]  ;;  %v3676_v1 = vld [vmem:[#allocation5 + $0xec] sm:$0xf0] }
  0x1e   :  { %v2736_v2 = vld [vmem:[#allocation5 + $0x1e0] sm:$0xf]  ;;  %v2609_v3 = vor.u32 %v3676_v1, %v2608_v0  ;;  %v3708_v4 = vld [vmem:[#allocation5 + $0x1ec] sm:$0xf0]  ;;  %s4173_s4 = smov [#allocation13]   ;;  %s2465_s15 = sshll.u32 %s4329_s7, 4  ;;  %s2466_s15 = int_to_ptr.hbm [resolvable:$true] %s2465_s15 }
  0x1f   :  { %v2864_v5 = vld [vmem:[#allocation5 + $0x2e0] sm:$0xf]  ;;  %v3740_v6 = vld [vmem:[#allocation5 + $0x2ec] sm:$0xf0]  ;;  %v2737_v7 = vor.u32 %v3708_v4, %v2736_v2  ;;  %s2463_s5 = sshll.u32 %s4173_s4, 4  ;;  %s4174_s18 = smov [#allocation14]   ;;  %s2464_s5 = int_to_ptr.vmem [resolvable:$true] %s2463_s5 }
  0x20   :  { %v2865_v8 = vor.u32 %v3740_v6, %v2864_v5  ;;  %v2992_v9 = vld [vmem:[#allocation5 + $0x3e0] sm:$0xf]  ;;  %v3772_v10 = vld [vmem:[#allocation5 + $0x3ec] sm:$0xf0]  ;;  %904 = vmatpush.bf16.msra.mxu0 %v2609_v3  ;;  %s2474_s19 = sshll.u32 %s4174_s18, 4  ;;  %s2476_s20 = sshll.u32 %s4330_s8, 4  ;;  %s2475_s19 = int_to_ptr.vmem [resolvable:$true] %s2474_s19  ;;  %s2477_s20 = int_to_ptr.hbm [resolvable:$true] %s2476_s20 }
  0x21   :  { %v2592_v11 = vld [vmem:[#allocation5 + $0xc0] sm:$0xf]  ;;  %v2993_v12 = vor.u32 %v3772_v10, %v2992_v9  ;;  %v3672_v13 = vld [vmem:[#allocation5 + $0xcc] sm:$0xf0]  ;;  %917 = vmatpush.bf16.msra.mxu1 %v2737_v7 }
  0x22   :  { %v2720_v14 = vld [vmem:[#allocation5 + $0x1c0] sm:$0xf]  ;;  %v3704_v15 = vld [vmem:[#allocation5 + $0x1cc] sm:$0xf0]  ;;  %930 = vmatpush.bf16.msra.mxu2 %v2865_v8  ;;  %v2593_v16 = vor.u32 %v3672_v13, %v2592_v11 }
  0x23   :  { %v2721_v17 = vor.u32 %v3704_v15, %v2720_v14  ;;  %v2848_v18 = vld [vmem:[#allocation5 + $0x2c0] sm:$0xf]  ;;  %v3736_v19 = vld [vmem:[#allocation5 + $0x2cc] sm:$0xf0]  ;;  %943 = vmatpush.bf16.msra.mxu3 %v2993_v12 }
  0x24   :  { %v2976_v20 = vld [vmem:[#allocation5 + $0x3c0] sm:$0xf]  ;;  %v2849_v21 = vor.u32 %v3736_v19, %v2848_v18  ;;  %v3768_v22 = vld [vmem:[#allocation5 + $0x3cc] sm:$0xf0]  ;;  %905 = vmatpush.bf16.msra.mxu0 %v2593_v16 }
  0x25   :  { %v2576_v23 = vld [vmem:[#allocation5 + $0xa0] sm:$0xf]  ;;  %v3668_v24 = vld [vmem:[#allocation5 + $0xac] sm:$0xf0]  ;;  %v2977_v25 = vor.u32 %v3768_v22, %v2976_v20  ;;  %918 = vmatpush.bf16.msra.mxu1 %v2721_v17 }
  0x26   :  { %v2704_v26 = vld [vmem:[#allocation5 + $0x1a0] sm:$0xf]  ;;  %v3700_v27 = vld [vmem:[#allocation5 + $0x1ac] sm:$0xf0]  ;;  %v2577_v29 = vor.u32 %v3668_v24, %v2576_v23  ;;  %931 = vmatpush.bf16.msra.mxu2 %v2849_v21 }
  0x27   :  { %v2832_v28 = vld [vmem:[#allocation5 + $0x2a0] sm:$0xf]  ;;  %v3732_v30 = vld [vmem:[#allocation5 + $0x2ac] sm:$0xf0]  ;;  %v2705_v33 = vor.u32 %v3700_v27, %v2704_v26  ;;  %944 = vmatpush.bf16.msra.mxu3 %v2977_v25 }
  0x28   :  { %v2960_v31 = vld [vmem:[#allocation5 + $0x3a0] sm:$0xf]  ;;  %v3764_v32 = vld [vmem:[#allocation5 + $0x3ac] sm:$0xf0]  ;;  %v2833_v34 = vor.u32 %v3732_v30, %v2832_v28  ;;  %906 = vmatpush.bf16.msra.mxu0 %v2577_v29  ;;  %v3674_v28 = vld [vmem:[#allocation5 + $0xe4] sm:$0xf] }
  0x29   :  { %v2560_v35 = vld [vmem:[#allocation5 + $0x80] sm:$0xf]  ;;  %v3664_v36 = vld [vmem:[#allocation5 + $0x8c] sm:$0xf0]  ;;  %v2961_v38 = vor.u32 %v3764_v32, %v2960_v31  ;;  %919 = vmatpush.bf16.msra.mxu1 %v2705_v33  ;;  %v2610_v29 = vld [vmem:[#allocation5 + $0xf0] sm:$0xf0] }
  0x2a   :  { %v2688_v37 = vld [vmem:[#allocation5 + $0x180] sm:$0xf]  ;;  %v3696_v39 = vld [vmem:[#allocation5 + $0x18c] sm:$0xf0]  ;;  %v2561_v44 = vor.u32 %v3664_v36, %v2560_v35  ;;  %932 = vmatpush.bf16.msra.mxu2 %v2833_v34  ;;  %v3706_v30 = vld [vmem:[#allocation5 + $0x1e4] sm:$0xf] }
  0x2b   :  { %v2816_v40 = vld [vmem:[#allocation5 + $0x280] sm:$0xf]  ;;  %v3728_v41 = vld [vmem:[#allocation5 + $0x28c] sm:$0xf0]  ;;  %v2689_v45 = vor.u32 %v3696_v39, %v2688_v37  ;;  %945 = vmatpush.bf16.msra.mxu3 %v2961_v38  ;;  %v2738_v32 = vld [vmem:[#allocation5 + $0x1f0] sm:$0xf0] }
  0x2c   :  { %v2944_v42 = vld [vmem:[#allocation5 + $0x380] sm:$0xf]  ;;  %v3760_v43 = vld [vmem:[#allocation5 + $0x38c] sm:$0xf0]  ;;  %v2817_v46 = vor.u32 %v3728_v41, %v2816_v40  ;;  %907 = vmatpush.bf16.msra.mxu0 %v2561_v44  ;;  %v3738_v33 = vld [vmem:[#allocation5 + $0x2e4] sm:$0xf]  ;;  %v2613_v41 = vor.u32 %v3674_v28, %v2610_v29 }
  0x2d   :  { %v2544_v47 = vld [vmem:[#allocation5 + $0x60] sm:$0xf]  ;;  %v3660_v48 = vld [vmem:[#allocation5 + $0x6c] sm:$0xf0]  ;;  %v2945_v50 = vor.u32 %v3760_v43, %v2944_v42  ;;  %920 = vmatpush.bf16.msra.mxu1 %v2689_v45  ;;  %v2866_v34 = vld [vmem:[#allocation5 + $0x2f0] sm:$0xf0]  ;;  %v2741_v45 = vor.u32 %v3706_v30, %v2738_v32 }
  0x2e   :  { %v2672_v49 = vld [vmem:[#allocation5 + $0x160] sm:$0xf]  ;;  %v3692_v51 = vld [vmem:[#allocation5 + $0x16c] sm:$0xf0]  ;;  %v2545_v56 = vor.u32 %v3660_v48, %v2544_v47  ;;  %933 = vmatpush.bf16.msra.mxu2 %v2817_v46  ;;  %v3770_v37 = vld [vmem:[#allocation5 + $0x3e4] sm:$0xf]  ;;  %v2869_v46 = vor.u32 %v3738_v33, %v2866_v34 }
  0x2f   :  { %v2800_v52 = vld [vmem:[#allocation5 + $0x260] sm:$0xf]  ;;  %v3724_v53 = vld [vmem:[#allocation5 + $0x26c] sm:$0xf0]  ;;  %v2673_v57 = vor.u32 %v3692_v51, %v2672_v49  ;;  %946 = vmatpush.bf16.msra.mxu3 %v2945_v50  ;;  %v2994_v38 = vld [vmem:[#allocation5 + $0x3f0] sm:$0xf0] }
  0x30   :  { %v2928_v54 = vld [vmem:[#allocation5 + $0x360] sm:$0xf]  ;;  %v3756_v55 = vld [vmem:[#allocation5 + $0x36c] sm:$0xf0]  ;;  %v2801_v58 = vor.u32 %v3724_v53, %v2800_v52  ;;  %908 = vmatpush.bf16.msra.mxu0 %v2545_v56  ;;  %v3670_v42 = vld [vmem:[#allocation5 + $0xc4] sm:$0xf]  ;;  %v2997_v50 = vor.u32 %v3770_v37, %v2994_v38 }
  0x31   :  { %v2528_v59 = vld [vmem:[#allocation5 + $0x40] sm:$0xf]  ;;  %v3656_v60 = vld [vmem:[#allocation5 + $0x4c] sm:$0xf0]  ;;  %v2929_v62 = vor.u32 %v3756_v55, %v2928_v54  ;;  %921 = vmatpush.bf16.msra.mxu1 %v2673_v57  ;;  %v121_v44 = vld [vmem:[#allocation2 + $0x18] sm:$0xff] }
  0x32   :  { %v2656_v61 = vld [vmem:[#allocation5 + $0x140] sm:$0xf]  ;;  %v3688_v63 = vld [vmem:[#allocation5 + $0x14c] sm:$0xf0]  ;;  %v2529_v4 = vor.u32 %v3656_v60, %v2528_v59  ;;  %934 = vmatpush.bf16.msra.mxu2 %v2801_v58  ;;  %v2594_v47 = vld [vmem:[#allocation5 + $0xd0] sm:$0xf0]  ;;  %v4242_v58 = vpack.c.bf16 %v121_v44, %v121_v44 }
  0x33   :  { %v2784_v0 = vld [vmem:[#allocation5 + $0x240] sm:$0xf]  ;;  %v3720_v1 = vld [vmem:[#allocation5 + $0x24c] sm:$0xf0]  ;;  %v2657_v5 = vor.u32 %v3688_v63, %v2656_v61  ;;  %947 = vmatpush.bf16.msra.mxu3 %v2929_v62  ;;  %v3702_v48 = vld [vmem:[#allocation5 + $0x1c4] sm:$0xf]  ;;  %v2597_v59 = vor.u32 %v3670_v42, %v2594_v47 }
  0x34   :  { %v2912_v2 = vld [vmem:[#allocation5 + $0x340] sm:$0xf]  ;;  %v3752_v3 = vld [vmem:[#allocation5 + $0x34c] sm:$0xf0]  ;;  %v2785_v6 = vor.u32 %v3720_v1, %v2784_v0  ;;  %909 = vmatpush.bf16.msra.mxu0 %v2529_v4  ;;  %v119_v49 = vld [vmem:[#allocation2 + $0x8] sm:$0xff] }
  0x35   :  { %v2512_v7 = vld [vmem:[#allocation5 + $0x20] sm:$0xf]  ;;  %v3652_v8 = vld [vmem:[#allocation5 + $0x2c] sm:$0xf0]  ;;  %v2913_v10 = vor.u32 %v3752_v3, %v2912_v2  ;;  %922 = vmatpush.bf16.msra.mxu1 %v2657_v5  ;;  %v2722_v52 = vld [vmem:[#allocation5 + $0x1d0] sm:$0xf0]  ;;  %v4244_v60 = vpack.c.bf16 %v119_v49, %v119_v49 }
  0x36   :  { %v2640_v9 = vld [vmem:[#allocation5 + $0x120] sm:$0xf]  ;;  %v3684_v11 = vld [vmem:[#allocation5 + $0x12c] sm:$0xf0]  ;;  %v2513_v16 = vor.u32 %v3652_v8, %v2512_v7  ;;  %935 = vmatpush.bf16.msra.mxu2 %v2785_v6  ;;  %v3734_v53 = vld [vmem:[#allocation5 + $0x2c4] sm:$0xf]  ;;  %v2725_v61 = vor.u32 %v3702_v48, %v2722_v52 }
  0x37   :  { %v2768_v12 = vld [vmem:[#allocation5 + $0x220] sm:$0xf]  ;;  %v3716_v13 = vld [vmem:[#allocation5 + $0x22c] sm:$0xf0]  ;;  %v2641_v19 = vor.u32 %v3684_v11, %v2640_v9  ;;  %948 = vmatpush.bf16.msra.mxu3 %v2913_v10  ;;  %v2850_v54 = vld [vmem:[#allocation5 + $0x2d0] sm:$0xf0] }
  0x38   :  { %v2896_v14 = vld [vmem:[#allocation5 + $0x320] sm:$0xf]  ;;  %v3748_v15 = vld [vmem:[#allocation5 + $0x32c] sm:$0xf0]  ;;  %v2769_v20 = vor.u32 %v3716_v13, %v2768_v12  ;;  %910 = vmatpush.bf16.msra.mxu0 %v2513_v16  ;;  %v3766_v55 = vld [vmem:[#allocation5 + $0x3c4] sm:$0xf]  ;;  %v2853_v62 = vor.u32 %v3734_v53, %v2850_v54 }
  0x39   :  { %v2496_v17 = vld [vmem:[#allocation5] sm:$0xf]  ;;  %v3648_v18 = vld [vmem:[#allocation5 + $0xc] sm:$0xf0]  ;;  %v2897_v24 = vor.u32 %v3748_v15, %v2896_v14  ;;  %923 = vmatpush.bf16.msra.mxu1 %v2641_v19  ;;  %v2978_v56 = vld [vmem:[#allocation5 + $0x3d0] sm:$0xf0] }
  0x3a   :  { %v2624_v21 = vld [vmem:[#allocation5 + $0x100] sm:$0xf]  ;;  %v3680_v22 = vld [vmem:[#allocation5 + $0x10c] sm:$0xf0]  ;;  %v2497_v31 = vor.u32 %v3648_v18, %v2496_v17  ;;  %936 = vmatpush.bf16.msra.mxu2 %v2769_v20  ;;  %v3666_v63 = vld [vmem:[#allocation5 + $0xa4] sm:$0xf]  ;;  %v2981_v2 = vor.u32 %v3766_v55, %v2978_v56 }
  0x3b   :  { %v2752_v23 = vld [vmem:[#allocation5 + $0x200] sm:$0xf]  ;;  %v3712_v25 = vld [vmem:[#allocation5 + $0x20c] sm:$0xf0]  ;;  %v2625_v35 = vor.u32 %v3680_v22, %v2624_v21  ;;  %949 = vmatpush.bf16.msra.mxu3 %v2897_v24  ;;  %v2578_v0 = vld [vmem:[#allocation5 + $0xb0] sm:$0xf0] }
  0x3c   :  { %v2880_v26 = vld [vmem:[#allocation5 + $0x300] sm:$0xf]  ;;  %v3744_v27 = vld [vmem:[#allocation5 + $0x30c] sm:$0xf0]  ;;  %v2753_v36 = vor.u32 %v3712_v25, %v2752_v23  ;;  %911 = vmatpush.bf16.msra.mxu0 %v2497_v31  ;;  %v3698_v1 = vld [vmem:[#allocation5 + $0x1a4] sm:$0xf]  ;;  %v2581_v8 = vor.u32 %v3666_v63, %v2578_v0 }
  0x3d   :  { %v120_v39 = vld [vmem:[#allocation2 + $0x10] sm:$0xff]  ;;  %v2881_v40 = vor.u32 %v3744_v27, %v2880_v26  ;;  %v118_v43 = vld [vmem:[#allocation2] sm:$0xff]  ;;  %924 = vmatpush.bf16.msra.mxu1 %v2625_v35 }
  0x3e   :  { %v4238_v51 = vpack.c.bf16 %v120_v39, %v120_v39  ;;  %937 = vmatpush.bf16.msra.mxu2 %v2753_v36  ;;  %v4240_v57 = vpack.c.bf16 %v118_v43, %v118_v43  ;;  %v2706_v3 = vld [vmem:[#allocation5 + $0x1b0] sm:$0xf0]  ;;  %v3730_v4 = vld [vmem:[#allocation5 + $0x2a4] sm:$0xf] }
  0x3f   :  { %950 = vmatpush.bf16.msra.mxu3 %v2881_v40  ;;  %v2834_v5 = vld [vmem:[#allocation5 + $0x2b0] sm:$0xf0]  ;;  %v3762_v6 = vld [vmem:[#allocation5 + $0x3a4] sm:$0xf]  ;;  %v2709_v9 = vor.u32 %v3698_v1, %v2706_v3 }
  0x40   :  { %956 = vmatpush.bf16.msrb.mxu0 %v2613_v41  ;;  %v2962_v7 = vld [vmem:[#allocation5 + $0x3b0] sm:$0xf0]  ;;  %925 = vmatmul.bf16.vlgmr.msra.gmra.mxu1 %v4244_v60  ;;  %v2837_v10 = vor.u32 %v3730_v4, %v2834_v5  ;;  %v3662_v11 = vld [vmem:[#allocation5 + $0x84] sm:$0xf] }
  0x41   :  { %969 = vmatpush.bf16.msrb.mxu1 %v2741_v45  ;;  %938 = vmatmul.bf16.vlgmr.msra.gmra.mxu2 %v4238_v51  ;;  %v2562_v12 = vld [vmem:[#allocation5 + $0x90] sm:$0xf0]  ;;  %v3694_v13 = vld [vmem:[#allocation5 + $0x184] sm:$0xf]  ;;  %v2965_v14 = vor.u32 %v3762_v6, %v2962_v7 }
  0x42   :  { %982 = vmatpush.bf16.msrb.mxu2 %v2869_v46  ;;  %912 = vmatmul.bf16.vlgmr.msra.gmra.mxu0 %v4240_v57  ;;  %v2690_v15 = vld [vmem:[#allocation5 + $0x190] sm:$0xf0]  ;;  %v3726_v16 = vld [vmem:[#allocation5 + $0x284] sm:$0xf]  ;;  %v2565_v20 = vor.u32 %v3662_v11, %v2562_v12  ;;  %v3709_v12 = vld [vmem:[#allocation5 + $0x1f4] sm:$0xf0] }
  0x43   :  { %995 = vmatpush.bf16.msrb.mxu3 %v2997_v50  ;;  %v2818_v17 = vld [vmem:[#allocation5 + $0x290] sm:$0xf0]  ;;  %v3758_v18 = vld [vmem:[#allocation5 + $0x384] sm:$0xf]  ;;  %v2693_v21 = vor.u32 %v3694_v13, %v2690_v15  ;;  %v2872_v13 = vld [vmem:[#allocation5 + $0x2e8] sm:$0xf] }
  0x44   :  { %951 = vmatmul.bf16.vlgmr.msra.gmra.mxu3 %v4242_v58  ;;  %957 = vmatpush.bf16.msrb.mxu0 %v2597_v59  ;;  %v2946_v19 = vld [vmem:[#allocation5 + $0x390] sm:$0xf0]  ;;  %v2821_v22 = vor.u32 %v3726_v16, %v2818_v17  ;;  %v3658_v23 = vld [vmem:[#allocation5 + $0x64] sm:$0xf]  ;;  %v3000_v17 = vld [vmem:[#allocation5 + $0x3e8] sm:$0xf] }
  0x45   :  { %970 = vmatpush.bf16.msrb.mxu1 %v2725_v61  ;;  %v2546_v24 = vld [vmem:[#allocation5 + $0x70] sm:$0xf0]  ;;  %v3690_v25 = vld [vmem:[#allocation5 + $0x164] sm:$0xf]  ;;  %v2949_v26 = vor.u32 %v3758_v18, %v2946_v19  ;;  %v3773_v18 = vld [vmem:[#allocation5 + $0x3f4] sm:$0xf0] }
  0x46   :  { %983 = vmatpush.bf16.msrb.mxu2 %v2853_v62  ;;  %v2674_v27 = vld [vmem:[#allocation5 + $0x170] sm:$0xf0]  ;;  %v3722_v28 = vld [vmem:[#allocation5 + $0x264] sm:$0xf]  ;;  %v2549_v32 = vor.u32 %v3658_v23, %v2546_v24  ;;  %v2600_v23 = vld [vmem:[#allocation5 + $0xc8] sm:$0xf] }
  0x47   :  { %996 = vmatpush.bf16.msrb.mxu3 %v2981_v2  ;;  %v2802_v29 = vld [vmem:[#allocation5 + $0x270] sm:$0xf0]  ;;  %v3754_v30 = vld [vmem:[#allocation5 + $0x364] sm:$0xf]  ;;  %v2677_v33 = vor.u32 %v3690_v25, %v2674_v27  ;;  %v3673_v24 = vld [vmem:[#allocation5 + $0xd4] sm:$0xf0] }
  0x48   :  { %958 = vmatpush.bf16.msrb.mxu0 %v2581_v8  ;;  %v2930_v31 = vld [vmem:[#allocation5 + $0x370] sm:$0xf0]  ;;  %v2805_v34 = vor.u32 %v3722_v28, %v2802_v29  ;;  %v3654_v35 = vld [vmem:[#allocation5 + $0x44] sm:$0xf]  ;;  %v2616_v8 = vld [vmem:[#allocation5 + $0xe8] sm:$0xf] }
  0x49   :  { %971 = vmatpush.bf16.msrb.mxu1 %v2709_v9  ;;  %v2530_v36 = vld [vmem:[#allocation5 + $0x50] sm:$0xf0]  ;;  %v3686_v37 = vld [vmem:[#allocation5 + $0x144] sm:$0xf]  ;;  %v2933_v38 = vor.u32 %v3754_v30, %v2930_v31  ;;  %v3677_v9 = vld [vmem:[#allocation5 + $0xf4] sm:$0xf0] }
  0x4a   :  { %984 = vmatpush.bf16.msrb.mxu2 %v2837_v10  ;;  %v2658_v39 = vld [vmem:[#allocation5 + $0x150] sm:$0xf0]  ;;  %v3718_v40 = vld [vmem:[#allocation5 + $0x244] sm:$0xf]  ;;  %v2533_v44 = vor.u32 %v3654_v35, %v2530_v36  ;;  %v2744_v10 = vld [vmem:[#allocation5 + $0x1e8] sm:$0xf] }
  0x4b   :  { %997 = vmatpush.bf16.msrb.mxu3 %v2965_v14  ;;  %v2786_v41 = vld [vmem:[#allocation5 + $0x250] sm:$0xf0]  ;;  %v3750_v42 = vld [vmem:[#allocation5 + $0x344] sm:$0xf]  ;;  %v2661_v45 = vor.u32 %v3686_v37, %v2658_v39  ;;  %v3741_v14 = vld [vmem:[#allocation5 + $0x2f4] sm:$0xf0] }
  0x4c   :  { %959 = vmatpush.bf16.msrb.mxu0 %v2565_v20  ;;  %v2914_v43 = vld [vmem:[#allocation5 + $0x350] sm:$0xf0]  ;;  %v2789_v46 = vor.u32 %v3718_v40, %v2786_v41  ;;  %v3650_v47 = vld [vmem:[#allocation5 + $0x24] sm:$0xf]  ;;  %v2617_v20 = vor.u32 %v3677_v9, %v2616_v8  ;;  %v2728_v25 = vld [vmem:[#allocation5 + $0x1c8] sm:$0xf] }
  0x4d   :  { %972 = vmatpush.bf16.msrb.mxu1 %v2693_v21  ;;  %v2514_v48 = vld [vmem:[#allocation5 + $0x30] sm:$0xf0]  ;;  %v3682_v49 = vld [vmem:[#allocation5 + $0x124] sm:$0xf]  ;;  %v2917_v50 = vor.u32 %v3750_v42, %v2914_v43  ;;  %v2745_v21 = vor.u32 %v3709_v12, %v2744_v10  ;;  %v3705_v27 = vld [vmem:[#allocation5 + $0x1d4] sm:$0xf0] }
  0x4e   :  { %985 = vmatpush.bf16.msrb.mxu2 %v2821_v22  ;;  %v2642_v52 = vld [vmem:[#allocation5 + $0x130] sm:$0xf0]  ;;  %v3714_v53 = vld [vmem:[#allocation5 + $0x224] sm:$0xf]  ;;  %v2517_v59 = vor.u32 %v3650_v47, %v2514_v48  ;;  %v2873_v22 = vor.u32 %v3741_v14, %v2872_v13  ;;  %v2856_v28 = vld [vmem:[#allocation5 + $0x2c8] sm:$0xf] }
  0x4f   :  { %998 = vmatpush.bf16.msrb.mxu3 %v2949_v26  ;;  %v2770_v54 = vld [vmem:[#allocation5 + $0x230] sm:$0xf0]  ;;  %v3746_v55 = vld [vmem:[#allocation5 + $0x324] sm:$0xf]  ;;  %v2645_v63 = vor.u32 %v3682_v49, %v2642_v52  ;;  %v3001_v26 = vor.u32 %v3773_v18, %v3000_v17  ;;  %v3737_v29 = vld [vmem:[#allocation5 + $0x2d4] sm:$0xf0] }
  0x50   :  { %960 = vmatpush.bf16.msrb.mxu0 %v2549_v32  ;;  %v2898_v56 = vld [vmem:[#allocation5 + $0x330] sm:$0xf0]  ;;  %v3646_v61 = vld [vmem:[#allocation5 + $0x4] sm:$0xf]  ;;  %v2773_v0 = vor.u32 %v3714_v53, %v2770_v54  ;;  %v2984_v30 = vld [vmem:[#allocation5 + $0x3c8] sm:$0xf]  ;;  %v2601_v32 = vor.u32 %v3673_v24, %v2600_v23 }
  0x51   :  { %973 = vmatpush.bf16.msrb.mxu1 %v2677_v33  ;;  %v2498_v62 = vld [vmem:[#allocation5 + $0x10] sm:$0xf0]  ;;  %v3678_v1 = vld [vmem:[#allocation5 + $0x104] sm:$0xf]  ;;  %v2901_v4 = vor.u32 %v3746_v55, %v2898_v56  ;;  %v3769_v31 = vld [vmem:[#allocation5 + $0x3d4] sm:$0xf0]  ;;  %v2729_v33 = vor.u32 %v3705_v27, %v2728_v25 }
  0x52   :  { %986 = vmatpush.bf16.msrb.mxu2 %v2805_v34  ;;  %v2626_v2 = vld [vmem:[#allocation5 + $0x110] sm:$0xf0]  ;;  %v3710_v3 = vld [vmem:[#allocation5 + $0x204] sm:$0xf]  ;;  %v2501_v11 = vor.u32 %v3646_v61, %v2498_v62  ;;  %v2857_v34 = vor.u32 %v3737_v29, %v2856_v28  ;;  %v2584_v35 = vld [vmem:[#allocation5 + $0xa8] sm:$0xf] }
  0x53   :  { %999 = vmatpush.bf16.msrb.mxu3 %v2933_v38  ;;  %v2754_v5 = vld [vmem:[#allocation5 + $0x210] sm:$0xf0]  ;;  %v3742_v6 = vld [vmem:[#allocation5 + $0x304] sm:$0xf]  ;;  %v2629_v15 = vor.u32 %v3678_v1, %v2626_v2  ;;  %v3669_v36 = vld [vmem:[#allocation5 + $0xb4] sm:$0xf0]  ;;  %v2985_v38 = vor.u32 %v3769_v31, %v2984_v30 }
  0x54   :  { %961 = vmatpush.bf16.msrb.mxu0 %v2533_v44  ;;  %v2882_v7 = vld [vmem:[#allocation5 + $0x310] sm:$0xf0]  ;;  %v2757_v16 = vor.u32 %v3710_v3, %v2754_v5  ;;  %v2712_v37 = vld [vmem:[#allocation5 + $0x1a8] sm:$0xf]  ;;  %v3701_v39 = vld [vmem:[#allocation5 + $0x1b4] sm:$0xf0]  ;;  %v2585_v44 = vor.u32 %v3669_v36, %v2584_v35 }
  0x55   :  { %974 = vmatpush.bf16.msrb.mxu1 %v2661_v45  ;;  %v2885_v19 = vor.u32 %v3742_v6, %v2882_v7  ;;  %v2840_v40 = vld [vmem:[#allocation5 + $0x2a8] sm:$0xf]  ;;  %v3733_v41 = vld [vmem:[#allocation5 + $0x2b4] sm:$0xf0]  ;;  %v2713_v45 = vor.u32 %v3701_v39, %v2712_v37 }
  0x56   :  { %987 = vmatpush.bf16.msrb.mxu2 %v2789_v46  ;;  %v2968_v42 = vld [vmem:[#allocation5 + $0x3a8] sm:$0xf]  ;;  %v3765_v43 = vld [vmem:[#allocation5 + $0x3b4] sm:$0xf0]  ;;  %v2841_v46 = vor.u32 %v3733_v41, %v2840_v40 }
  0x57   :  { %1000 = vmatpush.bf16.msrb.mxu3 %v2917_v50  ;;  %v2568_v47 = vld [vmem:[#allocation5 + $0x88] sm:$0xf]  ;;  %v3665_v48 = vld [vmem:[#allocation5 + $0x94] sm:$0xf0]  ;;  %v2969_v50 = vor.u32 %v3765_v43, %v2968_v42 }
  0x58   :  { %962 = vmatpush.bf16.msrb.mxu0 %v2517_v59  ;;  %v2696_v49 = vld [vmem:[#allocation5 + $0x188] sm:$0xf]  ;;  %v3697_v52 = vld [vmem:[#allocation5 + $0x194] sm:$0xf0]  ;;  %v2569_v59 = vor.u32 %v3665_v48, %v2568_v47  ;;  %v2746_v48 = vld [vmem:[#allocation5 + $0x1f8] sm:$0xf0] }
  0x59   :  { %975 = vmatpush.bf16.msrb.mxu1 %v2645_v63  ;;  %v2824_v53 = vld [vmem:[#allocation5 + $0x288] sm:$0xf]  ;;  %v3729_v54 = vld [vmem:[#allocation5 + $0x294] sm:$0xf0]  ;;  %v2697_v61 = vor.u32 %v3697_v52, %v2696_v49  ;;  %v3739_v49 = vld [vmem:[#allocation5 + $0x2ec] sm:$0xf] }
  0x5a   :  { %988 = vmatpush.bf16.msrb.mxu2 %v2773_v0  ;;  %v2952_v55 = vld [vmem:[#allocation5 + $0x388] sm:$0xf]  ;;  %v3761_v56 = vld [vmem:[#allocation5 + $0x394] sm:$0xf0]  ;;  %v2825_v62 = vor.u32 %v3729_v54, %v2824_v53  ;;  %v3771_v54 = vld [vmem:[#allocation5 + $0x3ec] sm:$0xf] }
  0x5b   :  { %1001 = vmatpush.bf16.msrb.mxu3 %v2901_v4  ;;  %v2552_v63 = vld [vmem:[#allocation5 + $0x68] sm:$0xf]  ;;  %v3661_v0 = vld [vmem:[#allocation5 + $0x74] sm:$0xf0]  ;;  %v2953_v2 = vor.u32 %v3761_v56, %v2952_v55  ;;  %v3002_v55 = vld [vmem:[#allocation5 + $0x3f8] sm:$0xf0] }
  0x5c   :  { %963 = vmatpush.bf16.msrb.mxu0 %v2501_v11  ;;  %v2680_v1 = vld [vmem:[#allocation5 + $0x168] sm:$0xf]  ;;  %v3693_v3 = vld [vmem:[#allocation5 + $0x174] sm:$0xf0]  ;;  %v2553_v8 = vor.u32 %v3661_v0, %v2552_v63  ;;  %v3671_v63 = vld [vmem:[#allocation5 + $0xcc] sm:$0xf] }
  0x5d   :  { %976 = vmatpush.bf16.msrb.mxu1 %v2629_v15  ;;  %v2808_v4 = vld [vmem:[#allocation5 + $0x268] sm:$0xf]  ;;  %v3725_v5 = vld [vmem:[#allocation5 + $0x274] sm:$0xf0]  ;;  %v2681_v9 = vor.u32 %v3693_v3, %v2680_v1  ;;  %v2602_v0 = vld [vmem:[#allocation5 + $0xd8] sm:$0xf0] }
  0x5e   :  { %989 = vmatpush.bf16.msrb.mxu2 %v2757_v16  ;;  %v2936_v6 = vld [vmem:[#allocation5 + $0x368] sm:$0xf]  ;;  %v3757_v7 = vld [vmem:[#allocation5 + $0x374] sm:$0xf0]  ;;  %v2809_v10 = vor.u32 %v3725_v5, %v2808_v4  ;;  %v3703_v1 = vld [vmem:[#allocation5 + $0x1cc] sm:$0xf] }
  0x5f   :  { %1002 = vmatpush.bf16.msrb.mxu3 %v2885_v19  ;;  %964 = vmatmul.bf16.vlgmr.msrb.gmra.mxu0 %v4240_v57  ;;  %v2536_v11 = vld [vmem:[#allocation5 + $0x48] sm:$0xf]  ;;  %v3657_v12 = vld [vmem:[#allocation5 + $0x54] sm:$0xf0]  ;;  %v2937_v14 = vor.u32 %v3757_v7, %v2936_v6  ;;  %v2730_v3 = vld [vmem:[#allocation5 + $0x1d8] sm:$0xf0] }
  0x60   :  { %1008 = vmatpush.bf16.msra.mxu0 %v2617_v20  ;;  %977 = vmatmul.bf16.vlgmr.msrb.gmra.mxu1 %v4244_v60  ;;  %v2664_v13 = vld [vmem:[#allocation5 + $0x148] sm:$0xf]  ;;  %v3689_v15 = vld [vmem:[#allocation5 + $0x154] sm:$0xf0]  ;;  %v2537_v20 = vor.u32 %v3657_v12, %v2536_v11  ;;  %v3735_v4 = vld [vmem:[#allocation5 + $0x2cc] sm:$0xf] }
  0x61   :  { %1021 = vmatpush.bf16.msra.mxu1 %v2745_v21  ;;  %990 = vmatmul.bf16.vlgmr.msrb.gmra.mxu2 %v4238_v51  ;;  %v2792_v16 = vld [vmem:[#allocation5 + $0x248] sm:$0xf]  ;;  %v3721_v17 = vld [vmem:[#allocation5 + $0x254] sm:$0xf0]  ;;  %v2665_v21 = vor.u32 %v3689_v15, %v2664_v13  ;;  %v2858_v5 = vld [vmem:[#allocation5 + $0x2d8] sm:$0xf0] }
  0x62   :  { %1034 = vmatpush.bf16.msra.mxu2 %v2873_v22  ;;  %1003 = vmatmul.bf16.vlgmr.msrb.gmra.mxu3 %v4242_v58  ;;  %v2920_v18 = vld [vmem:[#allocation5 + $0x348] sm:$0xf]  ;;  %v3753_v19 = vld [vmem:[#allocation5 + $0x354] sm:$0xf0]  ;;  %v2793_v22 = vor.u32 %v3721_v17, %v2792_v16  ;;  %v3767_v6 = vld [vmem:[#allocation5 + $0x3cc] sm:$0xf] }
  0x63   :  { %1047 = vmatpush.bf16.msra.mxu3 %v3001_v26  ;;  %v2520_v23 = vld [vmem:[#allocation5 + $0x28] sm:$0xf]  ;;  %v3653_v24 = vld [vmem:[#allocation5 + $0x34] sm:$0xf0]  ;;  %v2921_v26 = vor.u32 %v3753_v19, %v2920_v18  ;;  %v2986_v7 = vld [vmem:[#allocation5 + $0x3d8] sm:$0xf0] }
  0x64   :  { %1009 = vmatpush.bf16.msra.mxu0 %v2601_v32  ;;  %v2648_v25 = vld [vmem:[#allocation5 + $0x128] sm:$0xf]  ;;  %v3685_v27 = vld [vmem:[#allocation5 + $0x134] sm:$0xf0]  ;;  %v2521_v32 = vor.u32 %v3653_v24, %v2520_v23  ;;  %v3667_v11 = vld [vmem:[#allocation5 + $0xac] sm:$0xf] }
  0x65   :  { %1022 = vmatpush.bf16.msra.mxu1 %v2729_v33  ;;  %v2776_v28 = vld [vmem:[#allocation5 + $0x228] sm:$0xf]  ;;  %v3717_v29 = vld [vmem:[#allocation5 + $0x234] sm:$0xf0]  ;;  %v2649_v35 = vor.u32 %v3685_v27, %v2648_v25  ;;  %v2586_v12 = vld [vmem:[#allocation5 + $0xb8] sm:$0xf0] }
  0x66   :  { %1035 = vmatpush.bf16.msra.mxu2 %v2857_v34  ;;  %v2904_v30 = vld [vmem:[#allocation5 + $0x328] sm:$0xf]  ;;  %v3749_v31 = vld [vmem:[#allocation5 + $0x334] sm:$0xf0]  ;;  %v2777_v36 = vor.u32 %v3717_v29, %v2776_v28  ;;  %v3699_v13 = vld [vmem:[#allocation5 + $0x1ac] sm:$0xf] }
  0x67   :  { %1048 = vmatpush.bf16.msra.mxu3 %v2985_v38  ;;  %v2504_v33 = vld [vmem:[#allocation5 + $0x8] sm:$0xf]  ;;  %v3649_v34 = vld [vmem:[#allocation5 + $0x14] sm:$0xf0]  ;;  %v2905_v40 = vor.u32 %v3749_v31, %v2904_v30  ;;  %v2714_v15 = vld [vmem:[#allocation5 + $0x1b8] sm:$0xf0] }
  0x68   :  { %1010 = vmatpush.bf16.msra.mxu0 %v2585_v44  ;;  %v2632_v37 = vld [vmem:[#allocation5 + $0x108] sm:$0xf]  ;;  %v3681_v38 = vld [vmem:[#allocation5 + $0x114] sm:$0xf0]  ;;  %v3675_v44 = vld [vmem:[#allocation5 + $0xec] sm:$0xf]  ;;  %v2505_v47 = vor.u32 %v3649_v34, %v2504_v33 }
  0x69   :  { %1023 = vmatpush.bf16.msra.mxu1 %v2713_v45  ;;  %v2760_v39 = vld [vmem:[#allocation5 + $0x208] sm:$0xf]  ;;  %v3713_v41 = vld [vmem:[#allocation5 + $0x214] sm:$0xf0]  ;;  %v2618_v45 = vld [vmem:[#allocation5 + $0xf8] sm:$0xf0]  ;;  %v2633_v52 = vor.u32 %v3681_v38, %v2632_v37 }
  0x6a   :  { %1036 = vmatpush.bf16.msra.mxu2 %v2841_v46  ;;  %v2888_v42 = vld [vmem:[#allocation5 + $0x308] sm:$0xf]  ;;  %v3745_v43 = vld [vmem:[#allocation5 + $0x314] sm:$0xf0]  ;;  %v3707_v46 = vld [vmem:[#allocation5 + $0x1ec] sm:$0xf]  ;;  %v2761_v53 = vor.u32 %v3713_v41, %v2760_v39 }
  0x6b   :  { %1049 = vmatpush.bf16.msra.mxu3 %v2969_v50  ;;  %v2874_v50 = vld [vmem:[#allocation5 + $0x2f8] sm:$0xf0]  ;;  %v2889_v56 = vor.u32 %v3745_v43, %v2888_v42  ;;  %v3731_v16 = vld [vmem:[#allocation5 + $0x2ac] sm:$0xf] }
  0x6c   :  { %1011 = vmatpush.bf16.msra.mxu0 %v2569_v59  ;;  %v2621_v59 = vor.u32 %v3675_v44, %v2618_v45  ;;  %v2842_v17 = vld [vmem:[#allocation5 + $0x2b8] sm:$0xf0]  ;;  %v3763_v18 = vld [vmem:[#allocation5 + $0x3ac] sm:$0xf] }
  0x6d   :  { %1024 = vmatpush.bf16.msra.mxu1 %v2697_v61  ;;  %v2749_v61 = vor.u32 %v3707_v46, %v2746_v48  ;;  %v2970_v19 = vld [vmem:[#allocation5 + $0x3b8] sm:$0xf0]  ;;  %v3663_v23 = vld [vmem:[#allocation5 + $0x8c] sm:$0xf] }
  0x6e   :  { %1037 = vmatpush.bf16.msra.mxu2 %v2825_v62  ;;  %v2877_v62 = vor.u32 %v3739_v49, %v2874_v50  ;;  %v2570_v24 = vld [vmem:[#allocation5 + $0x98] sm:$0xf0]  ;;  %v3695_v25 = vld [vmem:[#allocation5 + $0x18c] sm:$0xf] }
  0x6f   :  { %1050 = vmatpush.bf16.msra.mxu3 %v2953_v2  ;;  %v3005_v2 = vor.u32 %v3771_v54, %v3002_v55  ;;  %v2698_v27 = vld [vmem:[#allocation5 + $0x198] sm:$0xf0]  ;;  %v3727_v28 = vld [vmem:[#allocation5 + $0x28c] sm:$0xf] }
  0x70   :  { %1012 = vmatpush.bf16.msra.mxu0 %v2553_v8  ;;  %v2605_v8 = vor.u32 %v3671_v63, %v2602_v0  ;;  %v2826_v29 = vld [vmem:[#allocation5 + $0x298] sm:$0xf0]  ;;  %v3759_v30 = vld [vmem:[#allocation5 + $0x38c] sm:$0xf]  ;;  %v2701_v33 = vor.u32 %v3695_v25, %v2698_v27 }
  0x71   :  { %1025 = vmatpush.bf16.msra.mxu1 %v2681_v9  ;;  %v2733_v9 = vor.u32 %v3703_v1, %v2730_v3  ;;  %v2954_v31 = vld [vmem:[#allocation5 + $0x398] sm:$0xf0]  ;;  %v2829_v34 = vor.u32 %v3727_v28, %v2826_v29  ;;  %v3691_v37 = vld [vmem:[#allocation5 + $0x16c] sm:$0xf]  ;;  %v3104_v29 = vld [vmem:[#allocation8 + $0xc0] sm:$0xf] }
  0x72   :  { %1038 = vmatpush.bf16.msra.mxu2 %v2809_v10  ;;  %v2861_v10 = vor.u32 %v3735_v4, %v2858_v5  ;;  %v2957_v38 = vor.u32 %v3759_v30, %v2954_v31  ;;  %v2682_v39 = vld [vmem:[#allocation5 + $0x178] sm:$0xf0]  ;;  %v3755_v42 = vld [vmem:[#allocation5 + $0x36c] sm:$0xf]  ;;  %v3800_v30 = vld [vmem:[#allocation8 + $0xcc] sm:$0xf0] }
  0x73   :  { %1051 = vmatpush.bf16.msra.mxu3 %v2937_v14  ;;  %v2989_v14 = vor.u32 %v3767_v6, %v2986_v7  ;;  %v2810_v41 = vld [vmem:[#allocation5 + $0x278] sm:$0xf0]  ;;  %v2685_v45 = vor.u32 %v3691_v37, %v2682_v39  ;;  %v3687_v49 = vld [vmem:[#allocation5 + $0x14c] sm:$0xf]  ;;  %v3828_v39 = vld [vmem:[#allocation8 + $0x1ac] sm:$0xf0] }
  0x74   :  { %1013 = vmatpush.bf16.msra.mxu0 %v2537_v20  ;;  %v2589_v20 = vor.u32 %v3667_v11, %v2586_v12  ;;  %v2938_v43 = vld [vmem:[#allocation5 + $0x378] sm:$0xf0]  ;;  %v3751_v55 = vld [vmem:[#allocation5 + $0x34c] sm:$0xf] }
  0x75   :  { %1026 = vmatpush.bf16.msra.mxu1 %v2665_v21  ;;  %v2717_v21 = vor.u32 %v3699_v13, %v2714_v15  ;;  %v2538_v48 = vld [vmem:[#allocation5 + $0x58] sm:$0xf0]  ;;  %v2941_v50 = vor.u32 %v3755_v42, %v2938_v43  ;;  %v3651_v63 = vld [vmem:[#allocation5 + $0x2c] sm:$0xf]  ;;  %v3792_v42 = vld [vmem:[#allocation8 + $0x8c] sm:$0xf0] }
  0x76   :  { %1039 = vmatpush.bf16.msra.mxu2 %v2793_v22  ;;  %v2845_v22 = vor.u32 %v3731_v16, %v2842_v17  ;;  %v2794_v54 = vld [vmem:[#allocation5 + $0x258] sm:$0xf0]  ;;  %v3683_v1 = vld [vmem:[#allocation5 + $0x12c] sm:$0xf] }
  0x77   :  { %1052 = vmatpush.bf16.msra.mxu3 %v2921_v26  ;;  %v2973_v26 = vor.u32 %v3763_v18, %v2970_v19  ;;  %v2522_v0 = vld [vmem:[#allocation5 + $0x38] sm:$0xf0]  ;;  %v3715_v4 = vld [vmem:[#allocation5 + $0x22c] sm:$0xf] }
  0x78   :  { %1014 = vmatpush.bf16.msra.mxu0 %v2521_v32  ;;  %v2573_v32 = vor.u32 %v3663_v23, %v2570_v24  ;;  %v2650_v3 = vld [vmem:[#allocation5 + $0x138] sm:$0xf0]  ;;  %v3747_v6 = vld [vmem:[#allocation5 + $0x32c] sm:$0xf]  ;;  %v3248_v23 = vld [vmem:[#allocation8 + $0x1e0] sm:$0xf] }
  0x79   :  { %1027 = vmatpush.bf16.msra.mxu1 %v2649_v35  ;;  %v3659_v35 = vld [vmem:[#allocation5 + $0x6c] sm:$0xf]  ;;  %v2778_v5 = vld [vmem:[#allocation5 + $0x238] sm:$0xf0]  ;;  %v3836_v24 = vld [vmem:[#allocation8 + $0x1ec] sm:$0xf0] }
  0x7a   :  { %1040 = vmatpush.bf16.msra.mxu2 %v2777_v36  ;;  %v2554_v36 = vld [vmem:[#allocation5 + $0x78] sm:$0xf0]  ;;  %v2781_v11 = vor.u32 %v3715_v4, %v2778_v5  ;;  %v3679_v13 = vld [vmem:[#allocation5 + $0x10c] sm:$0xf]  ;;  %v3249_v31 = vor.u32 %v3836_v24, %v3248_v23  ;;  %v3376_v5 = vld [vmem:[#allocation8 + $0x2e0] sm:$0xf] }
  0x7b   :  { %1053 = vmatpush.bf16.msra.mxu3 %v2905_v40  ;;  %v3723_v40 = vld [vmem:[#allocation5 + $0x26c] sm:$0xf]  ;;  %v2557_v44 = vor.u32 %v3659_v35, %v2554_v36  ;;  %v2906_v7 = vld [vmem:[#allocation5 + $0x338] sm:$0xf0]  ;;  %v3088_v35 = vld [vmem:[#allocation8 + $0xa0] sm:$0xf] }
  0x7c   :  { %1015 = vmatpush.bf16.msra.mxu0 %v2505_v47  ;;  %v2813_v46 = vor.u32 %v3723_v40, %v2810_v41  ;;  %v3655_v47 = vld [vmem:[#allocation5 + $0x4c] sm:$0xf]  ;;  %v2506_v12 = vld [vmem:[#allocation5 + $0x18] sm:$0xf0]  ;;  %v2909_v15 = vor.u32 %v3747_v6, %v2906_v7  ;;  %v3796_v36 = vld [vmem:[#allocation8 + $0xac] sm:$0xf0] }
  0x7d   :  { %1028 = vmatpush.bf16.msra.mxu1 %v2633_v52  ;;  %v2666_v52 = vld [vmem:[#allocation5 + $0x158] sm:$0xf0]  ;;  %v3711_v16 = vld [vmem:[#allocation5 + $0x20c] sm:$0xf]  ;;  %v3089_v40 = vor.u32 %v3796_v36, %v3088_v35  ;;  %v3072_v41 = vld [vmem:[#allocation8 + $0x80] sm:$0xf] }
  0x7e   :  { %1041 = vmatpush.bf16.msra.mxu2 %v2761_v53  ;;  %v3719_v53 = vld [vmem:[#allocation5 + $0x24c] sm:$0xf]  ;;  %v2762_v17 = vld [vmem:[#allocation5 + $0x218] sm:$0xf0]  ;;  %v3868_v6 = vld [vmem:[#allocation8 + $0x2ec] sm:$0xf0] }
  0x7f   :  { %1054 = vmatpush.bf16.msra.mxu3 %v2889_v56  ;;  %1016 = vmatmul.bf16.vlgmr.msra.gmra.mxu0 %v4240_v57  ;;  %v2922_v56 = vld [vmem:[#allocation5 + $0x358] sm:$0xf0]  ;;  %v3743_v18 = vld [vmem:[#allocation5 + $0x30c] sm:$0xf]  ;;  %v3122_v7 = vld [vmem:[#allocation8 + $0xf0] sm:$0xf0] }
  0x80   :  { %1060 = vmatpush.bf16.msrb.mxu0 %v2621_v59  ;;  %1029 = vmatmul.bf16.vlgmr.msra.gmra.mxu1 %v4244_v60  ;;  %v2541_v59 = vor.u32 %v3655_v47, %v2538_v48  ;;  %v2890_v19 = vld [vmem:[#allocation5 + $0x318] sm:$0xf0]  ;;  %v3788_v47 = vld [vmem:[#allocation8 + $0x6c] sm:$0xf0]  ;;  %v3184_v48 = vld [vmem:[#allocation8 + $0x160] sm:$0xf] }
  0x81   :  { %1073 = vmatpush.bf16.msrb.mxu1 %v2749_v61  ;;  %1042 = vmatmul.bf16.vlgmr.msra.gmra.mxu2 %v4238_v51  ;;  %v2669_v61 = vor.u32 %v3687_v49, %v2666_v52  ;;  %v2893_v27 = vor.u32 %v3743_v18, %v2890_v19  ;;  %v3798_v18 = vld [vmem:[#allocation8 + $0xc4] sm:$0xf]  ;;  %v3106_v19 = vld [vmem:[#allocation8 + $0xd0] sm:$0xf0]  ;;  %v3328_v35 = vld [vmem:[#allocation8 + $0x280] sm:$0xf] }
  0x82   :  { %1086 = vmatpush.bf16.msrb.mxu2 %v2877_v62  ;;  %1055 = vmatmul.bf16.vlgmr.msra.gmra.mxu3 %v4242_v58  ;;  %v2797_v62 = vor.u32 %v3719_v53, %v2794_v54  ;;  %v3168_v53 = vld [vmem:[#allocation8 + $0x140] sm:$0xf]  ;;  %v3816_v54 = vld [vmem:[#allocation8 + $0x14c] sm:$0xf0]  ;;  %v3234_v23 = vld [vmem:[#allocation8 + $0x1d0] sm:$0xf0]  ;;  %v3109_v24 = vor.u32 %v3798_v18, %v3106_v19 }
  0x83   :  { %1099 = vmatpush.bf16.msrb.mxu3 %v3005_v2  ;;  %v2925_v2 = vor.u32 %v3751_v55, %v2922_v56  ;;  %v3024_v56 = vld [vmem:[#allocation8 + $0x20] sm:$0xf]  ;;  %v3856_v36 = vld [vmem:[#allocation8 + $0x28c] sm:$0xf0]  ;;  %v3774_v18 = vld [vmem:[#allocation8 + $0x4] sm:$0xf] }
  0x84   :  { %1061 = vmatpush.bf16.msrb.mxu0 %v2605_v8  ;;  %v2525_v8 = vor.u32 %v3651_v63, %v2522_v0  ;;  %v3812_v63 = vld [vmem:[#allocation8 + $0x12c] sm:$0xf0]  ;;  %v3010_v19 = vld [vmem:[#allocation8 + $0x10] sm:$0xf0] }
  0x85   :  { %1074 = vmatpush.bf16.msrb.mxu1 %v2733_v9  ;;  %v3647_v9 = vld [vmem:[#allocation5 + $0xc] sm:$0xf] }
  0x86   :  { %1087 = vmatpush.bf16.msrb.mxu2 %v2861_v10  ;;  %v2653_v10 = vor.u32 %v3683_v1, %v2650_v3  ;;  %v3008_v1 = vld [vmem:[#allocation8] sm:$0xf]  ;;  %v3802_v3 = vld [vmem:[#allocation8 + $0xe4] sm:$0xf] }
  0x87   :  { %1100 = vmatpush.bf16.msrb.mxu3 %v2989_v14  ;;  %v2634_v14 = vld [vmem:[#allocation5 + $0x118] sm:$0xf0] }
  0x88   :  { %1062 = vmatpush.bf16.msrb.mxu0 %v2589_v20  ;;  %v3120_v20 = vld [vmem:[#allocation8 + $0xe0] sm:$0xf]  ;;  %v2637_v25 = vor.u32 %v3679_v13, %v2634_v14  ;;  %v3125_v14 = vor.u32 %v3802_v3, %v3122_v7  ;;  %v3844_v7 = vld [vmem:[#allocation8 + $0x22c] sm:$0xf0] }
  0x89   :  { %1075 = vmatpush.bf16.msrb.mxu1 %v2717_v21  ;;  %v3804_v21 = vld [vmem:[#allocation8 + $0xec] sm:$0xf0] }
  0x8a   :  { %1088 = vmatpush.bf16.msrb.mxu2 %v2845_v22  ;;  %v2509_v22 = vor.u32 %v3647_v9, %v2506_v12  ;;  %v3121_v28 = vor.u32 %v3804_v21, %v3120_v20  ;;  %v3808_v9 = vld [vmem:[#allocation8 + $0x10c] sm:$0xf0]  ;;  %v3250_v12 = vld [vmem:[#allocation8 + $0x1f0] sm:$0xf0] }
  0x8b   :  { %1101 = vmatpush.bf16.msrb.mxu3 %v2973_v26  ;;  %v2765_v26 = vor.u32 %v3711_v16, %v2762_v17  ;;  %v3360_v16 = vld [vmem:[#allocation8 + $0x2c0] sm:$0xf]  ;;  %v3864_v17 = vld [vmem:[#allocation8 + $0x2cc] sm:$0xf0] }
  0x8c   :  { %1063 = vmatpush.bf16.msrb.mxu0 %v2573_v32  ;;  %v3232_v32 = vld [vmem:[#allocation8 + $0x1c0] sm:$0xf]  ;;  %v3361_v21 = vor.u32 %v3864_v17, %v3360_v16  ;;  %v3154_v16 = vld [vmem:[#allocation8 + $0x130] sm:$0xf0] }
  0x8d   :  { %1076 = vmatpush.bf16.msrb.mxu1 %v2701_v33  ;;  %v3832_v33 = vld [vmem:[#allocation8 + $0x1cc] sm:$0xf0] }
  0x8e   :  { %1089 = vmatpush.bf16.msrb.mxu2 %v2829_v34  ;;  %v3105_v34 = vor.u32 %v3800_v30, %v3104_v29  ;;  %v3233_v37 = vor.u32 %v3832_v33, %v3232_v32  ;;  %v3218_v32 = vld [vmem:[#allocation8 + $0x1b0] sm:$0xf0]  ;;  %v4262_v33 = vld [vmem:[#allocation7] sm:$0xf] }
  0x8f   :  { %1102 = vmatpush.bf16.msrb.mxu3 %v2957_v38  ;;  %v3216_v38 = vld [vmem:[#allocation8 + $0x1a0] sm:$0xf] }
  0x90   :  { %1064 = vmatpush.bf16.msrb.mxu0 %v2557_v44  ;;  %v3217_v43 = vor.u32 %v3828_v39, %v3216_v38  ;;  %v3200_v44 = vld [vmem:[#allocation8 + $0x180] sm:$0xf]  ;;  %v3074_v38 = vld [vmem:[#allocation8 + $0x90] sm:$0xf0] }
  0x91   :  { %1077 = vmatpush.bf16.msrb.mxu1 %v2685_v45  ;;  %v3073_v45 = vor.u32 %v3792_v42, %v3072_v41  ;;  %v256_v41 = vperm.slane %v4262_v33, 0  ;;  %v3822_v42 = vld [vmem:[#allocation8 + $0x184] sm:$0xf] }
  0x92   :  { %1090 = vmatpush.bf16.msrb.mxu2 %v2813_v46  ;;  %v3056_v46 = vld [vmem:[#allocation8 + $0x60] sm:$0xf] }
  0x93   :  { %1103 = vmatpush.bf16.msrb.mxu3 %v2941_v50  ;;  %v3057_v49 = vor.u32 %v3788_v47, %v3056_v46  ;;  %v3040_v50 = vld [vmem:[#allocation8 + $0x40] sm:$0xf]  ;;  %v3786_v47 = vld [vmem:[#allocation8 + $0x64] sm:$0xf] }
  0x94   :  { %1065 = vmatpush.bf16.msrb.mxu0 %v2541_v59  ;;  %v3780_v59 = vld [vmem:[#allocation8 + $0x2c] sm:$0xf0] }
  0x95   :  { %1078 = vmatpush.bf16.msrb.mxu1 %v2669_v61  ;;  %v3169_v61 = vor.u32 %v3816_v54, %v3168_v53  ;;  %v3025_v0 = vor.u32 %v3780_v59, %v3024_v56  ;;  %v3848_v56 = vld [vmem:[#allocation8 + $0x24c] sm:$0xf0]  ;;  %v3782_v59 = vld [vmem:[#allocation8 + $0x44] sm:$0xf] }
  0x96   :  { %1091 = vmatpush.bf16.msrb.mxu2 %v2797_v62  ;;  %v3152_v62 = vld [vmem:[#allocation8 + $0x120] sm:$0xf] }
  0x97   :  { %1104 = vmatpush.bf16.msrb.mxu3 %v2925_v2  ;;  %v3776_v2 = vld [vmem:[#allocation8 + $0xc] sm:$0xf0]  ;;  %v3153_v4 = vor.u32 %v3812_v63, %v3152_v62 }
  0x98   :  { %1066 = vmatpush.bf16.msrb.mxu0 %v2525_v8  ;;  %v3136_v8 = vld [vmem:[#allocation8 + $0x100] sm:$0xf]  ;;  %v3009_v13 = vor.u32 %v3776_v2, %v3008_v1  ;;  %v3814_v1 = vld [vmem:[#allocation8 + $0x144] sm:$0xf]  ;;  %v3170_v2 = vld [vmem:[#allocation8 + $0x150] sm:$0xf0] }
  0x99   :  { %1079 = vmatpush.bf16.msrb.mxu1 %v2653_v10  ;;  %v3377_v10 = vor.u32 %v3868_v6, %v3376_v5  ;;  %v3280_v6 = vld [vmem:[#allocation8 + $0x220] sm:$0xf] }
  0x9a   :  { %1092 = vmatpush.bf16.msrb.mxu2 %v2781_v11  ;;  %v3834_v11 = vld [vmem:[#allocation8 + $0x1e4] sm:$0xf] }
  0x9b   :  { %1105 = vmatpush.bf16.msrb.mxu3 %v2909_v15  ;;  %v3137_v15 = vor.u32 %v3808_v9, %v3136_v8  ;;  %v3253_v20 = vor.u32 %v3834_v11, %v3250_v12  ;;  %v3778_v9 = vld [vmem:[#allocation8 + $0x24] sm:$0xf]  ;;  %v3173_v12 = vor.u32 %v3814_v1, %v3170_v2  ;;  %v3330_v2 = vld [vmem:[#allocation8 + $0x290] sm:$0xf0] }
  0x9c   :  { %1067 = vmatpush.bf16.msrb.mxu0 %v2509_v22  ;;  %v3830_v22 = vld [vmem:[#allocation8 + $0x1c4] sm:$0xf] }
  0x9d   :  { %1080 = vmatpush.bf16.msrb.mxu1 %v2637_v25  ;;  %v3344_v25 = vld [vmem:[#allocation8 + $0x2a0] sm:$0xf]  ;;  %v3237_v29 = vor.u32 %v3830_v22, %v3234_v23  ;;  %v3805_v22 = vld [vmem:[#allocation8 + $0xf4] sm:$0xf0] }
  0x9e   :  { %1093 = vmatpush.bf16.msrb.mxu2 %v2765_v26  ;;  %v3860_v26 = vld [vmem:[#allocation8 + $0x2ac] sm:$0xf0]  ;;  %v3264_v23 = vld [vmem:[#allocation8 + $0x200] sm:$0xf] }
  0x9f   :  { %1106 = vmatpush.bf16.msrb.mxu3 %v2893_v27  ;;  %1068 = vmatmul.bf16.vlgmr.msrb.gmra.mxu0 %v4240_v57  ;;  %v3824_v57 = vld [vmem:[#allocation8 + $0x18c] sm:$0xf0]  ;;  %v3794_v27 = vld [vmem:[#allocation8 + $0xa4] sm:$0xf]  ;;  %v3345_v30 = vor.u32 %v3860_v26, %v3344_v25 }
  0xa0   :  { %1898 = vmatpush.bf16.msra.mxu0 %v3121_v28  ;;  %1081 = vmatmul.bf16.vlgmr.msrb.gmra.mxu1 %v4244_v60  ;;  %v3201_v60 = vor.u32 %v3824_v57, %v3200_v44  ;;  %v3090_v28 = vld [vmem:[#allocation8 + $0xb0] sm:$0xf0]  ;;  %v3312_v57 = vld [vmem:[#allocation8 + $0x260] sm:$0xf] }
  0xa1   :  { %1911 = vmatpush.bf16.msra.mxu1 %v3249_v31  ;;  %1094 = vmatmul.bf16.vlgmr.msrb.gmra.mxu2 %v4238_v51  ;;  %v3820_v51 = vld [vmem:[#allocation8 + $0x16c] sm:$0xf0]  ;;  %v3826_v31 = vld [vmem:[#allocation8 + $0x1a4] sm:$0xf] }
  0xa2   :  { %1107 = vmatmul.bf16.vlgmr.msrb.gmra.mxu3 %v4242_v58  ;;  %v3784_v58 = vld [vmem:[#allocation8 + $0x4c] sm:$0xf0]  ;;  %v3185_v52 = vor.u32 %v3820_v51, %v3184_v48  ;;  %1924 = vmatpush.bf16.msra.mxu2 %v3377_v10  ;;  %v3221_v39 = vor.u32 %v3826_v31, %v3218_v32  ;;  %v3026_v10 = vld [vmem:[#allocation8 + $0x30] sm:$0xf0] }
  0xa3   :  { %v3041_v55 = vor.u32 %v3784_v58, %v3040_v50  ;;  %v3818_v58 = vld [vmem:[#allocation8 + $0x164] sm:$0xf]  ;;  %v3138_v32 = vld [vmem:[#allocation8 + $0x110] sm:$0xf0] }
  0xa4   :  { %1899 = vmatpush.bf16.msra.mxu0 %v3105_v34  ;;  %v3093_v34 = vor.u32 %v3794_v27, %v3090_v28  ;;  %v3806_v28 = vld [vmem:[#allocation8 + $0x104] sm:$0xf] }
  0xa5   :  { %1912 = vmatpush.bf16.msra.mxu1 %v3233_v37  ;;  %v3790_v37 = vld [vmem:[#allocation8 + $0x84] sm:$0xf] }
  0xa6   :  { %1925 = vmatpush.bf16.msra.mxu2 %v3361_v21  ;;  %v3077_v44 = vor.u32 %v3790_v37, %v3074_v38  ;;  %v3128_v21 = vld [vmem:[#allocation8 + $0xe8] sm:$0xf] }
  0xa8   :  { %1900 = vmatpush.bf16.msra.mxu0 %v3089_v40  ;;  %v3329_v40 = vor.u32 %v3856_v36, %v3328_v35  ;;  %v3866_v35 = vld [vmem:[#allocation8 + $0x2e4] sm:$0xf]  ;;  %v3378_v36 = vld [vmem:[#allocation8 + $0x2f0] sm:$0xf0] }
  0xa9   :  { %1913 = vmatpush.bf16.msra.mxu1 %v3217_v43  ;;  %v3202_v43 = vld [vmem:[#allocation8 + $0x190] sm:$0xf0]  ;;  %v3381_v38 = vor.u32 %v3866_v35, %v3378_v36  ;;  %v3842_v35 = vld [vmem:[#allocation8 + $0x224] sm:$0xf]  ;;  %v3032_v36 = vld [vmem:[#allocation8 + $0x28] sm:$0xf] }
  0xaa   :  { %1926 = vmatpush.bf16.msra.mxu2 %v3345_v30  ;;  %v3205_v48 = vor.u32 %v3822_v42, %v3202_v43  ;;  %v3900_v30 = vld [vmem:[#allocation8 + $0x3ec] sm:$0xf0]  ;;  %v3488_v42 = vld [vmem:[#allocation8 + $0x3c0] sm:$0xf] }
  0xab   :  { %v3896_v43 = vld [vmem:[#allocation8 + $0x3cc] sm:$0xf0] }
  0xac   :  { %1901 = vmatpush.bf16.msra.mxu0 %v3073_v45  ;;  %v3852_v45 = vld [vmem:[#allocation8 + $0x26c] sm:$0xf0] }
  0xad   :  { %1914 = vmatpush.bf16.msra.mxu1 %v3201_v60  ;;  %v3058_v60 = vld [vmem:[#allocation8 + $0x70] sm:$0xf0]  ;;  %v3313_v51 = vor.u32 %v3852_v45, %v3312_v57  ;;  %v3112_v57 = vld [vmem:[#allocation8 + $0xc8] sm:$0xf]  ;;  %v3801_v45 = vld [vmem:[#allocation8 + $0xd4] sm:$0xf0] }
  0xae   :  { %1927 = vmatpush.bf16.msra.mxu2 %v3329_v40  ;;  %v3061_v53 = vor.u32 %v3786_v47, %v3058_v60  ;;  %v3129_v40 = vor.u32 %v3805_v22, %v3128_v21  ;;  %v3362_v47 = vld [vmem:[#allocation8 + $0x2d0] sm:$0xf0]  ;;  %v3048_v22 = vld [vmem:[#allocation8 + $0x48] sm:$0xf] }
  0xb0   :  { %1902 = vmatpush.bf16.msra.mxu0 %v3057_v49 }
  0xb1   :  { %1915 = vmatpush.bf16.msra.mxu1 %v3185_v52  ;;  %v3186_v52 = vld [vmem:[#allocation8 + $0x170] sm:$0xf0] }
  0xb2   :  { %1928 = vmatpush.bf16.msra.mxu2 %v3313_v51  ;;  %v3189_v62 = vor.u32 %v3818_v58, %v3186_v52  ;;  %v3472_v51 = vld [vmem:[#allocation8 + $0x3a0] sm:$0xf]  ;;  %v3096_v58 = vld [vmem:[#allocation8 + $0xa8] sm:$0xf]  ;;  %v3797_v52 = vld [vmem:[#allocation8 + $0xb4] sm:$0xf0] }
  0xb4   :  { %1903 = vmatpush.bf16.msra.mxu0 %v3041_v55  ;;  %v3296_v55 = vld [vmem:[#allocation8 + $0x240] sm:$0xf] }
  0xb5   :  { %1916 = vmatpush.bf16.msra.mxu1 %v3169_v61  ;;  %v3042_v61 = vld [vmem:[#allocation8 + $0x50] sm:$0xf0]  ;;  %v3297_v63 = vor.u32 %v3848_v56, %v3296_v55  ;;  %v3097_v56 = vor.u32 %v3797_v52, %v3096_v58  ;;  %v3240_v52 = vld [vmem:[#allocation8 + $0x1c8] sm:$0xf] }
  0xb6   :  { %v3045_v5 = vor.u32 %v3782_v59, %v3042_v61  ;;  %v3456_v59 = vld [vmem:[#allocation8 + $0x380] sm:$0xf]  ;;  %v3888_v61 = vld [vmem:[#allocation8 + $0x38c] sm:$0xf0] }
  0xb7   :  { %1929 = vmatpush.bf16.msra.mxu2 %v3297_v63  ;;  %v3080_v63 = vld [vmem:[#allocation8 + $0x88] sm:$0xf]  ;;  %v3457_v1 = vor.u32 %v3888_v61, %v3456_v59  ;;  %v3833_v59 = vld [vmem:[#allocation8 + $0x1d4] sm:$0xf0] }
  0xb8   :  { %1904 = vmatpush.bf16.msra.mxu0 %v3025_v0 }
  0xb9   :  { %1917 = vmatpush.bf16.msra.mxu1 %v3153_v4 }
  0xbc   :  { %1905 = vmatpush.bf16.msra.mxu0 %v3009_v13  ;;  %v3281_v13 = vor.u32 %v3844_v7, %v3280_v6  ;;  %v3440_v6 = vld [vmem:[#allocation8 + $0x360] sm:$0xf]  ;;  %v3884_v7 = vld [vmem:[#allocation8 + $0x36c] sm:$0xf0] }
  0xbd   :  { %1918 = vmatpush.bf16.msra.mxu1 %v3137_v15  ;;  %v926_v50 = vpop.f32.mrf.mxu1  ;;  %v3810_v15 = vld [vmem:[#allocation8 + $0x124] sm:$0xf] }
  0xbe   :  { %1930 = vmatpush.bf16.msra.mxu2 %v3281_v13  ;;  %v3157_v26 = vor.u32 %v3810_v15, %v3154_v16 }
  0xbf   :  { %v913_v46 = vpop.f32.mrf.mxu0 }
  0xc0   :  { %1950 = vmatpush.bf16.msrb.mxu0 %v3125_v14  ;;  %v914_v49 = vadd.f32 %v913_v46, %v256_v41  ;;  %v3141_v41 = vor.u32 %v3806_v28, %v3138_v32  ;;  %v3489_v46 = vor.u32 %v3896_v43, %v3488_v42  ;;  %v3408_v32 = vld [vmem:[#allocation8 + $0x320] sm:$0xf]  ;;  %v3837_v42 = vld [vmem:[#allocation8 + $0x1f4] sm:$0xf0] }
  0xc1   :  { %1963 = vmatpush.bf16.msrb.mxu1 %v3253_v20  ;;  %v3029_v20 = vor.u32 %v3778_v9, %v3026_v10  ;;  %v3064_v9 = vld [vmem:[#allocation8 + $0x68] sm:$0xf]  ;;  %v3789_v10 = vld [vmem:[#allocation8 + $0x74] sm:$0xf0] }
  0xc2   :  { %v927_v54 = vadd.f32 %v926_v50, %v914_v49  ;;  %v3892_v49 = vld [vmem:[#allocation8 + $0x3ac] sm:$0xf0]  ;;  %v3858_v50 = vld [vmem:[#allocation8 + $0x2a4] sm:$0xf] }
  0xc4   :  { %1951 = vmatpush.bf16.msrb.mxu0 %v3109_v24  ;;  %v939_v0 = vpop.f32.mrf.mxu2  ;;  %v3840_v24 = vld [vmem:[#allocation8 + $0x20c] sm:$0xf0] }
  0xc5   :  { %1964 = vmatpush.bf16.msrb.mxu1 %v3237_v29  ;;  %v940_v3 = vadd.f32 %v939_v0, %v927_v54  ;;  %v928_v14 = vpop.f32.mrf.mxu1  ;;  %v3265_v27 = vor.u32 %v3840_v24, %v3264_v23  ;;  %v3504_v29 = vld [vmem:[#allocation8 + $0x3e0] sm:$0xf]  ;;  %v3346_v54 = vld [vmem:[#allocation8 + $0x2b0] sm:$0xf0]  ;;  %v3793_v0 = vld [vmem:[#allocation8 + $0x94] sm:$0xf0] }
  0xc6   :  { %v3349_v55 = vor.u32 %v3858_v50, %v3346_v54  ;;  %v3785_v23 = vld [vmem:[#allocation8 + $0x54] sm:$0xf0]  ;;  %v3872_v50 = vld [vmem:[#allocation8 + $0x30c] sm:$0xf0]  ;;  %v3838_v54 = vld [vmem:[#allocation8 + $0x204] sm:$0xf] }
  0xc7   :  { %v952_v4 = vpop.f32.mrf.mxu3  ;;  %v915_v11 = vpop.f32.mrf.mxu0  ;;  %1931 = vmatpush.bf16.msra.mxu2 %v3265_v27 }
  0xc8   :  { %1952 = vmatpush.bf16.msrb.mxu0 %v3093_v34  ;;  %v953_v8 = vadd.f32 %v952_v4, %v940_v3  ;;  %v3505_v34 = vor.u32 %v3900_v30, %v3504_v29  ;;  %v257_v4 = vperm.slane %v4262_v33, 1  ;;  %v3441_v11 = vor.u32 %v3884_v7, %v3440_v6  ;;  %v3799_v6 = vld [vmem:[#allocation8 + $0xcc] sm:$0xf]  ;;  %v3894_v7 = vld [vmem:[#allocation8 + $0x3c4] sm:$0xf] }
  0xc9   :  { %1965 = vmatpush.bf16.msrb.mxu1 %v3221_v39  ;;  %v3013_v39 = vor.u32 %v3774_v18, %v3010_v19  ;;  %v3424_v18 = vld [vmem:[#allocation8 + $0x340] sm:$0xf]  ;;  %v3880_v19 = vld [vmem:[#allocation8 + $0x34c] sm:$0xf0] }
  0xca   :  { %v1112_v17 = vmax.f32 %v953_v8, 0.0  ;;  %1937 = vmatpush.bf16.msra.mxu3 %v3505_v34  ;;  %v3850_v8 = vld [vmem:[#allocation8 + $0x264] sm:$0xf]  ;;  %v3425_v24 = vor.u32 %v3880_v19, %v3424_v18  ;;  %v3876_v34 = vld [vmem:[#allocation8 + $0x32c] sm:$0xf0] }
  0xcb   :  { %1976 = vmatpush.bf16.msrb.mxu2 %v3381_v38  ;;  %v3409_v38 = vor.u32 %v3876_v34, %v3408_v32  ;;  %v3098_v18 = vld [vmem:[#allocation8 + $0xb8] sm:$0xf0]  ;;  %v3208_v19 = vld [vmem:[#allocation8 + $0x188] sm:$0xf]  ;;  %v258_v32 = vperm.slane %v4262_v33, 2 }
  0xcc   :  { %1953 = vmatpush.bf16.msrb.mxu0 %v3077_v44  ;;  %v4265_v25 = vpack.c.bf16 %v1112_v17, %v1112_v17  ;;  %v941_v31 = vpop.f32.mrf.mxu2  ;;  %v3862_v44 = vld [vmem:[#allocation8 + $0x2c4] sm:$0xf]  ;;  %v3065_v17 = vor.u32 %v3789_v10, %v3064_v9  ;;  %v3114_v9 = vld [vmem:[#allocation8 + $0xd8] sm:$0xf0]  ;;  %v3224_v10 = vld [vmem:[#allocation8 + $0x1a8] sm:$0xf] }
  0xcd   :  { %1966 = vmatpush.bf16.msrb.mxu1 %v3205_v48  ;;  %v3365_v60 = vor.u32 %v3862_v44, %v3362_v47  ;;  %v3113_v48 = vor.u32 %v3801_v45, %v3112_v57  ;;  %v3049_v31 = vor.u32 %v3785_v23, %v3048_v22  ;;  %v3016_v57 = vld [vmem:[#allocation8 + $0x8] sm:$0xf]  ;;  %v3777_v45 = vld [vmem:[#allocation8 + $0x14] sm:$0xf0]  ;;  %v3886_v22 = vld [vmem:[#allocation8 + $0x384] sm:$0xf] }
  0xce   :  { %1906 = vmatmul.bf16.vlgmr.msra.gmra.mxu0 %v4265_v25  ;;  %1938 = vmatpush.bf16.msra.mxu3 %v3489_v46  ;;  %v3458_v23 = vld [vmem:[#allocation8 + $0x390] sm:$0xf0] }
  0xcf   :  { %v954_v37 = vpop.f32.mrf.mxu3  ;;  %1977 = vmatpush.bf16.msrb.mxu2 %v3365_v60 }
  0xd0   :  { %1954 = vmatpush.bf16.msrb.mxu0 %v3061_v53  ;;  %v3473_v53 = vor.u32 %v3892_v49, %v3472_v51  ;;  %v3781_v37 = vld [vmem:[#allocation8 + $0x34] sm:$0xf0]  ;;  %v3130_v51 = vld [vmem:[#allocation8 + $0xf8] sm:$0xf0]  ;;  %v3392_v49 = vld [vmem:[#allocation8 + $0x300] sm:$0xf] }
  0xd1   :  { %1967 = vmatpush.bf16.msrb.mxu1 %v3189_v62  ;;  %v3854_v62 = vld [vmem:[#allocation8 + $0x284] sm:$0xf]  ;;  %v3033_v60 = vor.u32 %v3781_v37, %v3032_v36  ;;  %v3787_v36 = vld [vmem:[#allocation8 + $0x6c] sm:$0xf] }
  0xd2   :  { %1939 = vmatpush.bf16.msra.mxu3 %v3473_v53  ;;  %v3333_v3 = vor.u32 %v3854_v62, %v3330_v2  ;;  %v3393_v53 = vor.u32 %v3872_v50, %v3392_v49  ;;  %v3898_v62 = vld [vmem:[#allocation8 + $0x3e4] sm:$0xf]  ;;  %v3017_v2 = vor.u32 %v3777_v45, %v3016_v57  ;;  %v3160_v49 = vld [vmem:[#allocation8 + $0x128] sm:$0xf]  ;;  %v3813_v50 = vld [vmem:[#allocation8 + $0x134] sm:$0xf0] }
  0xd3   :  { %1978 = vmatpush.bf16.msrb.mxu2 %v3349_v55  ;;  %v3266_v55 = vld [vmem:[#allocation8 + $0x210] sm:$0xf0]  ;;  %v3882_v37 = vld [vmem:[#allocation8 + $0x364] sm:$0xf] }
  0xd4   :  { %1955 = vmatpush.bf16.msrb.mxu0 %v3045_v5  ;;  %v3081_v5 = vor.u32 %v3793_v0, %v3080_v63  ;;  %v3269_v61 = vor.u32 %v3838_v54, %v3266_v55  ;;  %v3506_v63 = vld [vmem:[#allocation8 + $0x3f0] sm:$0xf0]  ;;  %v3161_v55 = vor.u32 %v3813_v50, %v3160_v49  ;;  %v3815_v50 = vld [vmem:[#allocation8 + $0x14c] sm:$0xf] }
  0xd5   :  { %1968 = vmatpush.bf16.msrb.mxu1 %v3173_v12  ;;  %v3314_v12 = vld [vmem:[#allocation8 + $0x270] sm:$0xf0] }
  0xd6   :  { %1940 = vmatpush.bf16.msra.mxu3 %v3457_v1  ;;  %v3317_v14 = vor.u32 %v3850_v8, %v3314_v12  ;;  %v3509_v1 = vor.u32 %v3898_v62, %v3506_v63  ;;  %v3490_v8 = vld [vmem:[#allocation8 + $0x3d0] sm:$0xf0] }
  0xd7   :  { %1979 = vmatpush.bf16.msrb.mxu2 %v3333_v3  ;;  %v3493_v12 = vor.u32 %v3894_v7, %v3490_v8  ;;  %v3410_v62 = vld [vmem:[#allocation8 + $0x330] sm:$0xf0] }
  0xd8   :  { %1956 = vmatpush.bf16.msrb.mxu0 %v3029_v20  ;;  %v3846_v20 = vld [vmem:[#allocation8 + $0x244] sm:$0xf] }
  0xd9   :  { %1969 = vmatpush.bf16.msrb.mxu1 %v3157_v26  ;;  %v3298_v26 = vld [vmem:[#allocation8 + $0x250] sm:$0xf0] }
  0xda   :  { %1941 = vmatpush.bf16.msra.mxu3 %v3441_v11  ;;  %v3301_v27 = vor.u32 %v3846_v20, %v3298_v26  ;;  %v3829_v11 = vld [vmem:[#allocation8 + $0x1b4] sm:$0xf0] }
  0xdb   :  { %1980 = vmatpush.bf16.msrb.mxu2 %v3317_v14  ;;  %v3474_v14 = vld [vmem:[#allocation8 + $0x3b0] sm:$0xf0]  ;;  %v3825_v20 = vld [vmem:[#allocation8 + $0x194] sm:$0xf0] }
  0xdc   :  { %1957 = vmatpush.bf16.msrb.mxu0 %v3013_v39  ;;  %v965_v13 = vpop.f32.mrf.mxu0  ;;  %v3282_v39 = vld [vmem:[#allocation8 + $0x230] sm:$0xf0]  ;;  %v3209_v26 = vor.u32 %v3825_v20, %v3208_v19  ;;  %v3018_v19 = vld [vmem:[#allocation8 + $0x18] sm:$0xf0] }
  0xdd   :  { %1970 = vmatpush.bf16.msrb.mxu1 %v3141_v41  ;;  %v966_v15 = vadd.f32 %v965_v13, %v257_v4  ;;  %v978_v16 = vpop.f32.mrf.mxu1  ;;  %v3256_v41 = vld [vmem:[#allocation8 + $0x1e8] sm:$0xf]  ;;  %v3285_v44 = vor.u32 %v3842_v35, %v3282_v39  ;;  %v3890_v13 = vld [vmem:[#allocation8 + $0x3a4] sm:$0xf]  ;;  %v3066_v39 = vld [vmem:[#allocation8 + $0x78] sm:$0xf0] }
  0xde   :  { %1942 = vmatpush.bf16.msra.mxu3 %v3425_v24  ;;  %v3257_v58 = vor.u32 %v3837_v42, %v3256_v41  ;;  %v3817_v41 = vld [vmem:[#allocation8 + $0x154] sm:$0xf0]  ;;  %v3069_v45 = vor.u32 %v3787_v36, %v3066_v39  ;;  %v3352_v36 = vld [vmem:[#allocation8 + $0x2a8] sm:$0xf] }
  0xdf   :  { %1958 = vmatmul.bf16.vlgmr.msrb.gmra.mxu0 %v4265_v25  ;;  %v979_v21 = vadd.f32 %v978_v16, %v966_v15  ;;  %1981 = vmatpush.bf16.msrb.mxu2 %v3301_v27  ;;  %v3117_v15 = vor.u32 %v3799_v6, %v3114_v9  ;;  %v3225_v16 = vor.u32 %v3829_v11, %v3224_v10  ;;  %v3791_v27 = vld [vmem:[#allocation8 + $0x8c] sm:$0xf]  ;;  %v3258_v6 = vld [vmem:[#allocation8 + $0x1f8] sm:$0xf0]  ;;  %v3384_v9 = vld [vmem:[#allocation8 + $0x2e8] sm:$0xf] }
  0xe0   :  { %2002 = vmatpush.bf16.msra.mxu0 %v3129_v40  ;;  %v3869_v10 = vld [vmem:[#allocation8 + $0x2f4] sm:$0xf0] }
  0xe1   :  { %v3385_v20 = vor.u32 %v3869_v10, %v3384_v9  ;;  %v3272_v10 = vld [vmem:[#allocation8 + $0x208] sm:$0xf] }
  0xe2   :  { %1943 = vmatpush.bf16.msra.mxu3 %v3409_v38  ;;  %v3442_v38 = vld [vmem:[#allocation8 + $0x370] sm:$0xf0] }
  0xe3   :  { %1982 = vmatpush.bf16.msrb.mxu2 %v3285_v44  ;;  %v3445_v42 = vor.u32 %v3882_v37, %v3442_v38  ;;  %v3861_v37 = vld [vmem:[#allocation8 + $0x2b4] sm:$0xf0] }
  0xe4   :  { %2003 = vmatpush.bf16.msra.mxu0 %v3113_v48  ;;  %v991_v28 = vpop.f32.mrf.mxu2  ;;  %v967_v43 = vpop.f32.mrf.mxu0  ;;  %v3803_v48 = vld [vmem:[#allocation8 + $0xec] sm:$0xf]  ;;  %v3353_v39 = vor.u32 %v3861_v37, %v3352_v36  ;;  %v3354_v36 = vld [vmem:[#allocation8 + $0x2b8] sm:$0xf0]  ;;  %v3480_v37 = vld [vmem:[#allocation8 + $0x3a8] sm:$0xf] }
  0xe5   :  { %v992_v29 = vadd.f32 %v991_v28, %v979_v21  ;;  %v1004_v30 = vpop.f32.mrf.mxu3  ;;  %v980_v46 = vpop.f32.mrf.mxu1  ;;  %v3133_v4 = vor.u32 %v3803_v48, %v3130_v51  ;;  %v3477_v21 = vor.u32 %v3890_v13, %v3474_v14  ;;  %v3082_v28 = vld [vmem:[#allocation8 + $0x98] sm:$0xf0]  ;;  %v3426_v48 = vld [vmem:[#allocation8 + $0x350] sm:$0xf0]  ;;  %v3870_v14 = vld [vmem:[#allocation8 + $0x304] sm:$0xf] }
  0xe6   :  { %1944 = vmatpush.bf16.msra.mxu3 %v3393_v53  ;;  %v3085_v34 = vor.u32 %v3791_v27, %v3082_v28  ;;  %v3050_v51 = vld [vmem:[#allocation8 + $0x58] sm:$0xf0]  ;;  %v3865_v27 = vld [vmem:[#allocation8 + $0x2d4] sm:$0xf0] }
  0xe7   :  { %v1005_v40 = vadd.f32 %v1004_v30, %v992_v29  ;;  %1983 = vmatpush.bf16.msrb.mxu2 %v3269_v61  ;;  %v3192_v29 = vld [vmem:[#allocation8 + $0x168] sm:$0xf]  ;;  %v3821_v30 = vld [vmem:[#allocation8 + $0x174] sm:$0xf0]  ;;  %v3874_v61 = vld [vmem:[#allocation8 + $0x324] sm:$0xf] }
  0xe8   :  { %2004 = vmatpush.bf16.msra.mxu0 %v3097_v56  ;;  %v3193_v35 = vor.u32 %v3821_v30, %v3192_v29 }
  0xe9   :  { %v1113_v47 = vmax.f32 %v1005_v40, 0.0  ;;  %v3176_v40 = vld [vmem:[#allocation8 + $0x148] sm:$0xf] }
  0xea   :  { %1989 = vmatpush.bf16.msrb.mxu3 %v3509_v1  ;;  %v3177_v46 = vor.u32 %v3817_v41, %v3176_v40  ;;  %v3034_v1 = vld [vmem:[#allocation8 + $0x38] sm:$0xf0]  ;;  %v3823_v40 = vld [vmem:[#allocation8 + $0x18c] sm:$0xf] }
  0xeb   :  { %v4270_v56 = vpack.c.bf16 %v1113_v47, %v1113_v47  ;;  %v3783_v47 = vld [vmem:[#allocation8 + $0x4c] sm:$0xf]  ;;  %v3210_v41 = vld [vmem:[#allocation8 + $0x198] sm:$0xf0] }
  0xec   :  { %2005 = vmatpush.bf16.msra.mxu0 %v3081_v5  ;;  %v993_v0 = vpop.f32.mrf.mxu2  ;;  %v3241_v5 = vor.u32 %v3833_v59, %v3240_v52  ;;  %v3053_v54 = vor.u32 %v3783_v47, %v3050_v51  ;;  %v3779_v59 = vld [vmem:[#allocation8 + $0x2c] sm:$0xf]  ;;  %v3320_v47 = vld [vmem:[#allocation8 + $0x268] sm:$0xf] }
  0xed   :  { %1919 = vmatmul.bf16.vlgmr.msra.gmra.mxu1 %v4270_v56  ;;  %v1006_v3 = vpop.f32.mrf.mxu3  ;;  %v3037_v11 = vor.u32 %v3779_v59, %v3034_v1  ;;  %v3845_v1 = vld [vmem:[#allocation8 + $0x234] sm:$0xf0] }
  0xee   :  { %2015 = vmatpush.bf16.msra.mxu1 %v3257_v58  ;;  %1990 = vmatpush.bf16.msrb.mxu3 %v3493_v12  ;;  %v3809_v3 = vld [vmem:[#allocation8 + $0x114] sm:$0xf0] }
  0xf0   :  { %2006 = vmatpush.bf16.msra.mxu0 %v3065_v17  ;;  %v3795_v17 = vld [vmem:[#allocation8 + $0xac] sm:$0xf] }
  0xf1   :  { %v3101_v24 = vor.u32 %v3795_v17, %v3098_v18  ;;  %v3775_v18 = vld [vmem:[#allocation8 + $0xc] sm:$0xf] }
  0xf2   :  { %2016 = vmatpush.bf16.msra.mxu1 %v3241_v5  ;;  %1991 = vmatpush.bf16.msrb.mxu3 %v3477_v21  ;;  %v3835_v5 = vld [vmem:[#allocation8 + $0x1ec] sm:$0xf]  ;;  %v3021_v28 = vor.u32 %v3775_v18, %v3018_v19  ;;  %v3901_v18 = vld [vmem:[#allocation8 + $0x3f4] sm:$0xf0] }
  0xf3   :  { %v3261_v17 = vor.u32 %v3835_v5, %v3258_v6  ;;  %v3831_v21 = vld [vmem:[#allocation8 + $0x1cc] sm:$0xf]  ;;  %v3146_v6 = vld [vmem:[#allocation8 + $0x118] sm:$0xf0] }
  0xf4   :  { %2007 = vmatpush.bf16.msra.mxu0 %v3049_v31  ;;  %v3461_v31 = vor.u32 %v3886_v22, %v3458_v23  ;;  %v3242_v22 = vld [vmem:[#allocation8 + $0x1d8] sm:$0xf0]  ;;  %v3807_v5 = vld [vmem:[#allocation8 + $0x10c] sm:$0xf] }
  0xf5   :  { %v3245_v30 = vor.u32 %v3831_v21, %v3242_v22 }
  0xf6   :  { %2017 = vmatpush.bf16.msra.mxu1 %v3225_v16  ;;  %1992 = vmatpush.bf16.msrb.mxu3 %v3461_v31 }
  0xf8   :  { %2008 = vmatpush.bf16.msra.mxu0 %v3033_v60  ;;  %v3878_v60 = vld [vmem:[#allocation8 + $0x344] sm:$0xf] }
  0xf9   :  { %v3429_v58 = vor.u32 %v3878_v60, %v3426_v48  ;;  %v3853_v60 = vld [vmem:[#allocation8 + $0x274] sm:$0xf0]  ;;  %v259_v48 = vperm.slane %v4262_v33, 3 }
  0xfa   :  { %2018 = vmatpush.bf16.msra.mxu1 %v3209_v26  ;;  %1993 = vmatpush.bf16.msrb.mxu3 %v3445_v42  ;;  %v3368_v26 = vld [vmem:[#allocation8 + $0x2c8] sm:$0xf]  ;;  %v3321_v49 = vor.u32 %v3853_v60, %v3320_v47  ;;  %v3885_v60 = vld [vmem:[#allocation8 + $0x374] sm:$0xf0] }
  0xfb   :  { %v3336_v42 = vld [vmem:[#allocation8 + $0x288] sm:$0xf] }
  0xfc   :  { %2009 = vmatpush.bf16.msra.mxu0 %v3017_v2  ;;  %v1017_v43 = vpop.f32.mrf.mxu0  ;;  %v3144_v2 = vld [vmem:[#allocation8 + $0x108] sm:$0xf] }
  0xfd   :  { %1971 = vmatmul.bf16.vlgmr.msrb.gmra.mxu1 %v4270_v56  ;;  %v1018_v44 = vadd.f32 %v1017_v43, %v258_v32  ;;  %v1030_v57 = vpop.f32.mrf.mxu1  ;;  %v3145_v12 = vor.u32 %v3809_v3, %v3144_v2  ;;  %v3369_v32 = vor.u32 %v3865_v27, %v3368_v26  ;;  %v3857_v43 = vld [vmem:[#allocation8 + $0x294] sm:$0xf0]  ;;  %v3370_v26 = vld [vmem:[#allocation8 + $0x2d8] sm:$0xf0]  ;;  %v3448_v47 = vld [vmem:[#allocation8 + $0x368] sm:$0xf] }
  0xfe   :  { %2019 = vmatpush.bf16.msra.mxu1 %v3193_v35  ;;  %1994 = vmatpush.bf16.msrb.mxu3 %v3429_v58  ;;  %v3226_v35 = vld [vmem:[#allocation8 + $0x1b8] sm:$0xf0] }
  0xff   :  { %2010 = vmatmul.bf16.vlgmr.msra.gmra.mxu0 %v4265_v25  ;;  %v1031_v52 = vadd.f32 %v1030_v57, %v1018_v44  ;;  %v3213_v44 = vor.u32 %v3823_v40, %v3210_v41  ;;  %v3337_v57 = vor.u32 %v3857_v43, %v3336_v42  ;;  %v3178_v58 = vld [vmem:[#allocation8 + $0x158] sm:$0xf0]  ;;  %v3855_v41 = vld [vmem:[#allocation8 + $0x28c] sm:$0xf]  ;;  %v3464_v43 = vld [vmem:[#allocation8 + $0x388] sm:$0xf] }
 0x100   :  { %2054 = vmatpush.bf16.msrb.mxu0 %v3133_v4  ;;  %v3413_v4 = vor.u32 %v3874_v61, %v3410_v62  ;;  %v3181_v59 = vor.u32 %v3815_v50, %v3178_v58  ;;  %v3811_v62 = vld [vmem:[#allocation8 + $0x12c] sm:$0xf]  ;;  %v3338_v42 = vld [vmem:[#allocation8 + $0x298] sm:$0xf0]  ;;  %v3432_v58 = vld [vmem:[#allocation8 + $0x348] sm:$0xf] }
 0x101   :  { %v3306_v50 = vld [vmem:[#allocation8 + $0x258] sm:$0xf0] }
 0x102   :  { %2020 = vmatpush.bf16.msra.mxu1 %v3177_v46  ;;  %1995 = vmatpush.bf16.msrb.mxu3 %v3413_v4  ;;  %v3194_v46 = vld [vmem:[#allocation8 + $0x178] sm:$0xf0] }
 0x104   :  { %2055 = vmatpush.bf16.msrb.mxu0 %v3117_v15  ;;  %v1043_v53 = vpop.f32.mrf.mxu2  ;;  %v1019_v8 = vpop.f32.mrf.mxu0  ;;  %v3394_v15 = vld [vmem:[#allocation8 + $0x310] sm:$0xf0] }
 0x105   :  { %v1044_v63 = vadd.f32 %v1043_v53, %v1031_v52  ;;  %v1056_v0 = vpop.f32.mrf.mxu3  ;;  %v1032_v13 = vpop.f32.mrf.mxu1  ;;  %v3397_v23 = vor.u32 %v3870_v14, %v3394_v15  ;;  %v3849_v53 = vld [vmem:[#allocation8 + $0x254] sm:$0xf0]  ;;  %v3386_v14 = vld [vmem:[#allocation8 + $0x2f8] sm:$0xf0] }
 0x106   :  { %2021 = vmatpush.bf16.msra.mxu1 %v3161_v55  ;;  %v3867_v13 = vld [vmem:[#allocation8 + $0x2ec] sm:$0xf] }
 0x107   :  { %v1057_v7 = vadd.f32 %v1056_v0, %v1044_v63  ;;  %1996 = vmatpush.bf16.msrb.mxu3 %v3397_v23  ;;  %v3162_v63 = vld [vmem:[#allocation8 + $0x138] sm:$0xf0]  ;;  %v3288_v0 = vld [vmem:[#allocation8 + $0x228] sm:$0xf]  ;;  %v3389_v21 = vor.u32 %v3867_v13, %v3386_v14  ;;  %v3863_v23 = vld [vmem:[#allocation8 + $0x2cc] sm:$0xf] }
 0x108   :  { %2056 = vmatpush.bf16.msrb.mxu0 %v3101_v24  ;;  %v3165_v2 = vor.u32 %v3811_v62, %v3162_v63  ;;  %v3289_v4 = vor.u32 %v3845_v1, %v3288_v0  ;;  %v3274_v0 = vld [vmem:[#allocation8 + $0x218] sm:$0xf0]  ;;  %v3400_v1 = vld [vmem:[#allocation8 + $0x308] sm:$0xf] }
 0x109   :  { %v1114_v16 = vmax.f32 %v1057_v7, 0.0 }
 0x10a   :  { %2022 = vmatpush.bf16.msra.mxu1 %v3145_v12 }
 0x10b   :  { %v4276_v24 = vpack.c.bf16 %v1114_v16, %v1114_v16  ;;  %v3149_v16 = vor.u32 %v3807_v5, %v3146_v6 }
 0x10c   :  { %2057 = vmatpush.bf16.msrb.mxu0 %v3085_v34  ;;  %v1045_v29 = vpop.f32.mrf.mxu2  ;;  %v3827_v34 = vld [vmem:[#allocation8 + $0x1ac] sm:$0xf] }
 0x10d   :  { %1932 = vmatmul.bf16.vlgmr.msra.gmra.mxu2 %v4276_v24  ;;  %v1058_v31 = vpop.f32.mrf.mxu3  ;;  %2023 = vmatmul.bf16.vlgmr.msra.gmra.mxu1 %v4270_v56  ;;  %v3229_v38 = vor.u32 %v3827_v34, %v3226_v35  ;;  %v3897_v29 = vld [vmem:[#allocation8 + $0x3d4] sm:$0xf0]  ;;  %v3859_v35 = vld [vmem:[#allocation8 + $0x2ac] sm:$0xf] }
 0x10e   :  { %2067 = vmatpush.bf16.msrb.mxu1 %v3261_v17  ;;  %2028 = vmatpush.bf16.msra.mxu2 %v3385_v20  ;;  %v3512_v17 = vld [vmem:[#allocation8 + $0x3e8] sm:$0xf] }
 0x10f   :  { %v3513_v22 = vor.u32 %v3901_v18, %v3512_v17  ;;  %v3883_v18 = vld [vmem:[#allocation8 + $0x36c] sm:$0xf] }
 0x110   :  { %2058 = vmatpush.bf16.msrb.mxu0 %v3069_v45  ;;  %v3819_v45 = vld [vmem:[#allocation8 + $0x16c] sm:$0xf] }
 0x111   :  { %v3197_v51 = vor.u32 %v3819_v45, %v3194_v46  ;;  %v3322_v46 = vld [vmem:[#allocation8 + $0x278] sm:$0xf0] }
 0x112   :  { %2068 = vmatpush.bf16.msrb.mxu1 %v3245_v30  ;;  %2029 = vmatpush.bf16.msra.mxu2 %v3369_v32  ;;  %v3373_v32 = vor.u32 %v3863_v23, %v3370_v26  ;;  %v3434_v23 = vld [vmem:[#allocation8 + $0x358] sm:$0xf0]  ;;  %v3875_v26 = vld [vmem:[#allocation8 + $0x32c] sm:$0xf] }
 0x114   :  { %2059 = vmatpush.bf16.msrb.mxu0 %v3053_v54 }
 0x116   :  { %2069 = vmatpush.bf16.msrb.mxu1 %v3229_v38  ;;  %2030 = vmatpush.bf16.msra.mxu2 %v3353_v39  ;;  %v3893_v38 = vld [vmem:[#allocation8 + $0x3b4] sm:$0xf0]  ;;  %v3357_v39 = vor.u32 %v3859_v35, %v3354_v36  ;;  %v4293_v35 = vld [vmem:[#allocation10] sm:$0xf] }
 0x117   :  { %v3481_v40 = vor.u32 %v3893_v38, %v3480_v37  ;;  %v1250_v36 = vperm.slane %v4293_v35, 0 }
 0x118   :  { %2060 = vmatpush.bf16.msrb.mxu0 %v3037_v11  ;;  %v3841_v11 = vld [vmem:[#allocation8 + $0x214] sm:$0xf0] }
 0x119   :  { %v3273_v19 = vor.u32 %v3841_v11, %v3272_v10  ;;  %v3891_v11 = vld [vmem:[#allocation8 + $0x3ac] sm:$0xf] }
 0x11a   :  { %2070 = vmatpush.bf16.msrb.mxu1 %v3213_v44  ;;  %2031 = vmatpush.bf16.msra.mxu2 %v3337_v57  ;;  %v3889_v44 = vld [vmem:[#allocation8 + $0x394] sm:$0xf0]  ;;  %v3341_v57 = vor.u32 %v3855_v41, %v3338_v42 }
 0x11b   :  { %v3465_v45 = vor.u32 %v3889_v44, %v3464_v43 }
 0x11c   :  { %2061 = vmatpush.bf16.msrb.mxu0 %v3021_v28  ;;  %v1069_v52 = vpop.f32.mrf.mxu0  ;;  %v3496_v28 = vld [vmem:[#allocation8 + $0x3c8] sm:$0xf] }
 0x11d   :  { %v1070_v54 = vadd.f32 %v1069_v52, %v259_v48  ;;  %v1082_v55 = vpop.f32.mrf.mxu1  ;;  %1984 = vmatmul.bf16.vlgmr.msrb.gmra.mxu2 %v4276_v24  ;;  %v3497_v34 = vor.u32 %v3897_v29, %v3496_v28  ;;  %v3881_v52 = vld [vmem:[#allocation8 + $0x354] sm:$0xf0]  ;;  %v3418_v28 = vld [vmem:[#allocation8 + $0x338] sm:$0xf0] }
 0x11e   :  { %2071 = vmatpush.bf16.msrb.mxu1 %v3197_v51  ;;  %2032 = vmatpush.bf16.msra.mxu2 %v3321_v49  ;;  %v3449_v51 = vor.u32 %v3885_v60, %v3448_v47  ;;  %v3847_v49 = vld [vmem:[#allocation8 + $0x24c] sm:$0xf]  ;;  %v3421_v29 = vor.u32 %v3875_v26, %v3418_v28 }
 0x11f   :  { %2062 = vmatmul.bf16.vlgmr.msrb.gmra.mxu0 %v4265_v25  ;;  %v3304_v25 = vld [vmem:[#allocation8 + $0x248] sm:$0xf]  ;;  %v1083_v33 = vadd.f32 %v1082_v55, %v1070_v54  ;;  %v3843_v54 = vld [vmem:[#allocation8 + $0x22c] sm:$0xf]  ;;  %v3290_v55 = vld [vmem:[#allocation8 + $0x238] sm:$0xf0] }
 0x120   :  { %v3305_v61 = vor.u32 %v3849_v53, %v3304_v25  ;;  %v3309_v25 = vor.u32 %v3847_v49, %v3306_v50  ;;  %v3433_v53 = vor.u32 %v3881_v52, %v3432_v58  ;;  %v3293_v62 = vor.u32 %v3843_v54, %v3290_v55  ;;  %v3909_v49 = vld [vmem:[#allocation11 + $0x38] sm:$0xff]  ;;  %v3908_v52 = vld [vmem:[#allocation11 + $0x30] sm:$0xff]  ;;  %v3915_v54 = vld [vmem:[#allocation11 + $0x68] sm:$0xff] }
 0x121   :  { %2404 = vmatpush.bf16.msra.mxu0 %v3909_v49  ;;  %v3929_v49 = vld [vmem:[#allocation11 + $0xd8] sm:$0xff] }
 0x122   :  { %2072 = vmatpush.bf16.msrb.mxu1 %v3181_v59  ;;  %2033 = vmatpush.bf16.msra.mxu2 %v3305_v61  ;;  %v3416_v59 = vld [vmem:[#allocation8 + $0x328] sm:$0xf]  ;;  %v3877_v61 = vld [vmem:[#allocation8 + $0x334] sm:$0xf0] }
 0x123   :  { %v3417_v63 = vor.u32 %v3877_v61, %v3416_v59  ;;  %v3906_v59 = vld [vmem:[#allocation11 + $0x20] sm:$0xff] }
 0x124   :  { %v1095_v3 = vpop.f32.mrf.mxu2  ;;  %v1071_v9 = vpop.f32.mrf.mxu0  ;;  %v3914_v61 = vld [vmem:[#allocation11 + $0x60] sm:$0xff] }
 0x125   :  { %v1096_v7 = vadd.f32 %v1095_v3, %v1083_v33  ;;  %v1108_v8 = vpop.f32.mrf.mxu3  ;;  %v1084_v12 = vpop.f32.mrf.mxu1  ;;  %v3839_v33 = vld [vmem:[#allocation8 + $0x20c] sm:$0xf]  ;;  %v3498_v9 = vld [vmem:[#allocation8 + $0x3d8] sm:$0xf0]  ;;  %2405 = vmatpush.bf16.msra.mxu0 %v3908_v52 }
 0x126   :  { %2073 = vmatpush.bf16.msrb.mxu1 %v3165_v2  ;;  %2034 = vmatpush.bf16.msra.mxu2 %v3289_v4  ;;  %v3873_v2 = vld [vmem:[#allocation8 + $0x314] sm:$0xf0]  ;;  %v3899_v3 = vld [vmem:[#allocation8 + $0x3ec] sm:$0xf]  ;;  %v3514_v4 = vld [vmem:[#allocation8 + $0x3f8] sm:$0xf0]  ;;  %v3277_v5 = vor.u32 %v3839_v33, %v3274_v0 }
 0x127   :  { %v1109_v15 = vadd.f32 %v1108_v8, %v1096_v7  ;;  %v3401_v6 = vor.u32 %v3873_v2, %v3400_v1  ;;  %v3517_v7 = vor.u32 %v3899_v3, %v3514_v4  ;;  %v3895_v8 = vld [vmem:[#allocation8 + $0x3cc] sm:$0xf]  ;;  %v3482_v12 = vld [vmem:[#allocation8 + $0x3b8] sm:$0xf0]  ;;  %v3904_v1 = vld [vmem:[#allocation11 + $0x10] sm:$0xff] }
 0x128   :  { %v3501_v10 = vor.u32 %v3895_v8, %v3498_v9  ;;  %v3485_v13 = vor.u32 %v3891_v11, %v3482_v12  ;;  %v3912_v2 = vld [vmem:[#allocation11 + $0x50] sm:$0xff]  ;;  %v3903_v4 = vld [vmem:[#allocation11 + $0x8] sm:$0xff]  ;;  %v3902_v8 = vld [vmem:[#allocation11] sm:$0xff]  ;;  %v1251_v11 = vperm.slane %v4293_v35, 1 }
 0x129   :  { %v1115_v20 = vmax.f32 %v1109_v15, 0.0  ;;  %v3887_v15 = vld [vmem:[#allocation8 + $0x38c] sm:$0xf]  ;;  %v3910_v9 = vld [vmem:[#allocation11 + $0x40] sm:$0xff] }
 0x12a   :  { %2074 = vmatpush.bf16.msrb.mxu1 %v3149_v16  ;;  %2035 = vmatpush.bf16.msra.mxu2 %v3273_v19  ;;  %v3466_v16 = vld [vmem:[#allocation8 + $0x398] sm:$0xf0] }
 0x12b   :  { %v4283_v27 = vpack.c.bf16 %v1115_v20, %v1115_v20  ;;  %v3469_v17 = vor.u32 %v3887_v15, %v3466_v16  ;;  %v3450_v19 = vld [vmem:[#allocation8 + $0x378] sm:$0xf0] }
 0x12c   :  { %v1097_v30 = vpop.f32.mrf.mxu2  ;;  %v3453_v20 = vor.u32 %v3883_v18, %v3450_v19 }
 0x12d   :  { %v1110_v31 = vpop.f32.mrf.mxu3  ;;  %1945 = vmatmul.bf16.vlgmr.msra.gmra.mxu3 %v4283_v27  ;;  %2075 = vmatmul.bf16.vlgmr.msrb.gmra.mxu1 %v4270_v56  ;;  %v3851_v56 = vld [vmem:[#allocation8 + $0x26c] sm:$0xf] }
 0x12e   :  { %2080 = vmatpush.bf16.msrb.mxu2 %v3389_v21  ;;  %2041 = vmatpush.bf16.msra.mxu3 %v3513_v22  ;;  %v3325_v48 = vor.u32 %v3851_v56, %v3322_v46  ;;  %v3879_v22 = vld [vmem:[#allocation8 + $0x34c] sm:$0xf] }
 0x12f   :  { %2036 = vmatmul.bf16.vlgmr.msra.gmra.mxu2 %v4276_v24  ;;  %v3871_v31 = vld [vmem:[#allocation8 + $0x30c] sm:$0xf] }
 0x132   :  { %2081 = vmatpush.bf16.msrb.mxu2 %v3373_v32  ;;  %2042 = vmatpush.bf16.msra.mxu3 %v3497_v34  ;;  %v3402_v32 = vld [vmem:[#allocation8 + $0x318] sm:$0xf0] }
 0x133   :  { %v3405_v34 = vor.u32 %v3871_v31, %v3402_v32 }
 0x136   :  { %2082 = vmatpush.bf16.msrb.mxu2 %v3357_v39  ;;  %2043 = vmatpush.bf16.msra.mxu3 %v3481_v40 }
 0x13a   :  { %2083 = vmatpush.bf16.msrb.mxu2 %v3341_v57  ;;  %2044 = vmatpush.bf16.msra.mxu3 %v3465_v45  ;;  %v1252_v45 = vperm.slane %v4293_v35, 2 }
 0x13d   :  { %1997 = vmatmul.bf16.vlgmr.msrb.gmra.mxu3 %v4283_v27 }
 0x13e   :  { %2084 = vmatpush.bf16.msrb.mxu2 %v3325_v48  ;;  %2045 = vmatpush.bf16.msra.mxu3 %v3449_v51 }
 0x142   :  { %2085 = vmatpush.bf16.msrb.mxu2 %v3309_v25  ;;  %2046 = vmatpush.bf16.msra.mxu3 %v3433_v53  ;;  %v3916_v25 = vld [vmem:[#allocation11 + $0x70] sm:$0xff]  ;;  %v3907_v53 = vld [vmem:[#allocation11 + $0x28] sm:$0xff] }
 0x143   :  { %2406 = vmatpush.bf16.msra.mxu0 %v3907_v53  ;;  %v3928_v53 = vld [vmem:[#allocation11 + $0xd0] sm:$0xff] }
 0x146   :  { %2086 = vmatpush.bf16.msrb.mxu2 %v3293_v62  ;;  %2047 = vmatpush.bf16.msra.mxu3 %v3417_v63  ;;  %v3905_v62 = vld [vmem:[#allocation11 + $0x18] sm:$0xff] }
 0x147   :  { %2407 = vmatpush.bf16.msra.mxu0 %v3906_v59  ;;  %v3913_v63 = vld [vmem:[#allocation11 + $0x58] sm:$0xff]  ;;  %v3918_v59 = vld [vmem:[#allocation11 + $0x80] sm:$0xff] }
 0x14a   :  { %2087 = vmatpush.bf16.msrb.mxu2 %v3277_v5  ;;  %2048 = vmatpush.bf16.msra.mxu3 %v3401_v6  ;;  %v3911_v5 = vld [vmem:[#allocation11 + $0x48] sm:$0xff] }
 0x14b   :  { %v1907_v14 = vpop.f32.mrf.mxu0  ;;  %2408 = vmatpush.bf16.msra.mxu0 %v3905_v62 }
 0x14c   :  { %v1908_v38 = vadd.f32 %v1907_v14, %v1250_v36  ;;  %v3923_v36 = vld [vmem:[#allocation11 + $0xa8] sm:$0xff] }
 0x14d   :  { %2088 = vmatmul.bf16.vlgmr.msrb.gmra.mxu2 %v4276_v24  ;;  %2049 = vmatmul.bf16.vlgmr.msra.gmra.mxu3 %v4283_v27  ;;  %v3437_v24 = vor.u32 %v3879_v22, %v3434_v23  ;;  %v3924_v23 = vld [vmem:[#allocation11 + $0xb0] sm:$0xff] }
 0x14e   :  { %2093 = vmatpush.bf16.msrb.mxu3 %v3517_v7 }
 0x14f   :  { %2409 = vmatpush.bf16.msra.mxu0 %v3904_v1 }
 0x152   :  { %2094 = vmatpush.bf16.msrb.mxu3 %v3501_v10 }
 0x153   :  { %v1909_v21 = vpop.f32.mrf.mxu0  ;;  %2410 = vmatpush.bf16.msra.mxu0 %v3903_v4 }
 0x154   :  { %v3933_v21 = vld [vmem:[#allocation11 + $0xf8] sm:$0xff] }
 0x156   :  { %2095 = vmatpush.bf16.msrb.mxu3 %v3485_v13 }
 0x157   :  { %2411 = vmatpush.bf16.msra.mxu0 %v3902_v8 }
 0x15a   :  { %2096 = vmatpush.bf16.msrb.mxu3 %v3469_v17 }
 0x15c   :  { %v4291_v30 = vpop.f32.mrf.mxu0 }
 0x15d   :  { %v1960_v15 = vadd.f32 %v4291_v30, %v1251_v11 }
 0x15e   :  { %2097 = vmatpush.bf16.msrb.mxu3 %v3453_v20  ;;  %v3925_v20 = vld [vmem:[#allocation11 + $0xb8] sm:$0xff] }
 0x15f   :  { %2430 = vmatpush.bf16.msra.mxu2 %v3925_v20 }
 0x162   :  { %2098 = vmatpush.bf16.msrb.mxu3 %v3437_v24  ;;  %v3932_v24 = vld [vmem:[#allocation11 + $0xf0] sm:$0xff] }
 0x163   :  { %2431 = vmatpush.bf16.msra.mxu2 %v3924_v23 }
 0x164   :  { %v1961_v37 = vpop.f32.mrf.mxu0 }
 0x165   :  { %v3931_v37 = vld [vmem:[#allocation11 + $0xe8] sm:$0xff] }
 0x166   :  { %2099 = vmatpush.bf16.msrb.mxu3 %v3421_v29 }
 0x167   :  { %2432 = vmatpush.bf16.msra.mxu2 %v3923_v36 }
 0x16a   :  { %2100 = vmatpush.bf16.msrb.mxu3 %v3405_v34  ;;  %v1920_v39 = vpop.f32.mrf.mxu1 }
 0x16b   :  { %v1921_v40 = vadd.f32 %v1920_v39, %v1908_v38 }
 0x16d   :  { %2101 = vmatmul.bf16.vlgmr.msrb.gmra.mxu3 %v4283_v27  ;;  %v3917_v27 = vld [vmem:[#allocation11 + $0x78] sm:$0xff] }
 0x16e   :  { %2417 = vmatpush.bf16.msra.mxu1 %v3917_v27  ;;  %2443 = vmatpush.bf16.msra.mxu3 %v3933_v21 }
 0x172   :  { %v1922_v42 = vpop.f32.mrf.mxu1  ;;  %2418 = vmatpush.bf16.msra.mxu1 %v3916_v25  ;;  %2444 = vmatpush.bf16.msra.mxu3 %v3932_v24  ;;  %v3920_v25 = vld [vmem:[#allocation11 + $0x90] sm:$0xff]  ;;  %v3946_v24 = vld [vmem:[%s4328_s6] ss:$0 sm:$0xff] }
 0x173   :  { %v3956_v42 = vld [vmem:[#allocation2 + $0x8] sm:$0xff] }
 0x176   :  { %2419 = vmatpush.bf16.msra.mxu1 %v3915_v54  ;;  %2445 = vmatpush.bf16.msra.mxu3 %v3931_v37  ;;  %v3919_v54 = vld [vmem:[#allocation11 + $0x88] sm:$0xff] }
 0x17a   :  { %v1972_v44 = vpop.f32.mrf.mxu1  ;;  %2420 = vmatpush.bf16.msra.mxu1 %v3914_v61  ;;  %v3926_v61 = vld [vmem:[#allocation11 + $0xc0] sm:$0xff] }
 0x17b   :  { %v1973_v17 = vadd.f32 %v1972_v44, %v1960_v15  ;;  %v3958_v15 = vld [vmem:[#allocation2 + $0x18] sm:$0xff] }
 0x17c   :  { %v2011_v41 = vpop.f32.mrf.mxu0 }
 0x17d   :  { %v2012_v56 = vadd.f32 %v2011_v41, %v1252_v45  ;;  %v3930_v45 = vld [vmem:[#allocation11 + $0xe0] sm:$0xff] }
 0x17e   :  { %2421 = vmatpush.bf16.msra.mxu1 %v3913_v63  ;;  %2446 = vmatpush.bf16.msra.mxu3 %v3930_v45  ;;  %v1253_v63 = vperm.slane %v4293_v35, 3  ;;  %v3957_v35 = vld [vmem:[#allocation2 + $0x10] sm:$0xff] }
 0x182   :  { %v1974_v57 = vpop.f32.mrf.mxu1  ;;  %2422 = vmatpush.bf16.msra.mxu1 %v3912_v2  ;;  %2447 = vmatpush.bf16.msra.mxu3 %v3929_v49 }
 0x183   :  { %v3922_v57 = vld [vmem:[#allocation11 + $0xa0] sm:$0xff] }
 0x184   :  { %v2013_v43 = vpop.f32.mrf.mxu0  ;;  %2433 = vmatpush.bf16.msra.mxu2 %v3922_v57 }
 0x186   :  { %2423 = vmatpush.bf16.msra.mxu1 %v3911_v5  ;;  %2448 = vmatpush.bf16.msra.mxu3 %v3928_v53 }
 0x18a   :  { %v2024_v46 = vpop.f32.mrf.mxu1  ;;  %2424 = vmatpush.bf16.msra.mxu1 %v3910_v9 }
 0x18b   :  { %v4298_v47 = vadd.f32 %v2024_v46, %v2012_v56 }
 0x190   :  { %v1933_v48 = vpop.f32.mrf.mxu2 }
 0x191   :  { %v1934_v10 = vadd.f32 %v1933_v48, %v1921_v40  ;;  %v3955_v40 = vld [vmem:[#allocation2] sm:$0xff] }
 0x192   :  { %v2026_v51 = vpop.f32.mrf.mxu1 }
 0x193   :  { %v3921_v51 = vld [vmem:[#allocation11 + $0x98] sm:$0xff] }
 0x194   :  { %2434 = vmatpush.bf16.msra.mxu2 %v3921_v51 }
 0x198   :  { %v1935_v58 = vpop.f32.mrf.mxu2  ;;  %2435 = vmatpush.bf16.msra.mxu2 %v3920_v25 }
 0x19c   :  { %v4300_v60 = vpop.f32.mrf.mxu0  ;;  %2436 = vmatpush.bf16.msra.mxu2 %v3919_v54 }
 0x19d   :  { %v2064_v1 = vadd.f32 %v4300_v60, %v1253_v63 }
 0x1a0   :  { %v1985_v55 = vpop.f32.mrf.mxu2  ;;  %2437 = vmatpush.bf16.msra.mxu2 %v3918_v59 }
 0x1a1   :  { %v1986_v18 = vadd.f32 %v1985_v55, %v1973_v17  ;;  %v3927_v55 = vld [vmem:[#allocation11 + $0xc8] sm:$0xff] }
 0x1a2   :  { %2449 = vmatpush.bf16.msra.mxu3 %v3927_v55 }
 0x1a4   :  { %v2065_v50 = vpop.f32.mrf.mxu0 }
 0x1a6   :  { %2450 = vmatpush.bf16.msra.mxu3 %v3926_v61 }
 0x1a8   :  { %v1987_v33 = vpop.f32.mrf.mxu2 }
 0x1aa   :  { %v4302_v0 = vpop.f32.mrf.mxu1 }
 0x1b0   :  { %v1946_v3 = vpop.f32.mrf.mxu3 }
 0x1b1   :  { %v1947_v12 = vadd.f32 %v1946_v3, %v1934_v10  ;;  %v2077_v3 = vadd.f32 %v4302_v0, %v2064_v1 }
 0x1b2   :  { %v4304_v6 = vpop.f32.mrf.mxu2  ;;  %v2078_v7 = vpop.f32.mrf.mxu1 }
 0x1b3   :  { %v2106_v16 = vmul.f32 0.5, %v1947_v12  ;;  %v2038_v62 = vadd.f32 %v4304_v6, %v4298_v47 }
 0x1b5   :  { %3947 = vtanh.f32 %v2106_v16 }
 0x1b8   :  { %v1948_v13 = vpop.f32.mrf.mxu3 }
 0x1ba   :  { %v2039_v14 = vpop.f32.mrf.mxu2 }
 0x1bb   :  { %v3948_v28 = vpop.eup %3947 }
 0x1bc   :  { %v2114_v29 = vmul.f32 0.5, %v3948_v28 }
 0x1be   :  { %v2118_v32 = vadd.f32 0.5, %v2114_v29 }
 0x1c0   :  { %v1998_v19 = vpop.f32.mrf.mxu3  ;;  %v2122_v41 = vmul.f32 %v3955_v40, %v2118_v32 }
 0x1c1   :  { %v1999_v22 = vadd.f32 %v1998_v19, %v1986_v18 }
 0x1c3   :  { %v2107_v26 = vmul.f32 0.5, %v1999_v22 }
 0x1c5   :  { %3949 = vtanh.f32 %v2107_v26 }
 0x1c8   :  { %v2000_v31 = vpop.f32.mrf.mxu3 }
 0x1cb   :  { %v3950_v30 = vpop.eup %3949 }
 0x1cc   :  { %v2115_v34 = vmul.f32 0.5, %v3950_v30 }
 0x1ce   :  { %v2119_v38 = vadd.f32 0.5, %v2115_v34 }
 0x1d0   :  { %v2089_v39 = vpop.f32.mrf.mxu2  ;;  %v2123_v43 = vmul.f32 %v3956_v42, %v2119_v38  ;;  %v2050_v44 = vpop.f32.mrf.mxu3 }
 0x1d1   :  { %v2051_v33 = vadd.f32 %v2050_v44, %v2038_v62  ;;  %v2090_v4 = vadd.f32 %v2089_v39, %v2077_v3 }
 0x1d2   :  { %v2126_v56 = vpack.c.bf16 %v2123_v43, %v2122_v41 }
 0x1d3   :  { %v2108_v2 = vmul.f32 0.5, %v2051_v33 }
 0x1d4   :  { %2128 = vst [vmem:[#allocation13] sm:$0xff] %v2126_v56  ;;  %v2200_v46 = vunpack.c.l.b16 %v2126_v56  ;;  %v2201_v48 = vunpack.c.h.b16 %v2126_v56 }
 0x1d5   :  { %3951 = vtanh.f32 %v2108_v2 }
 0x1d6   :  { %v2204_v27 = vpack.c.b16 %v2200_v46, %v2200_v46  ;;  %v2205_v50 = vpack.c.b16 %v2201_v48, %v2201_v48 }
 0x1d8   :  { %v2091_v58 = vpop.f32.mrf.mxu2  ;;  %v2052_v52 = vpop.f32.mrf.mxu3  ;;  %2412 = vmatmul.bf16.vlgmr.msra.gmra.mxu0 %v2204_v27  ;;  %2425 = vmatmul.bf16.vlgmr.msra.gmra.mxu1 %v2205_v50 }
 0x1db   :  { %v3952_v9 = vpop.eup %3951 }
 0x1dc   :  { %v2116_v10 = vmul.f32 0.5, %v3952_v9 }
 0x1de   :  { %v2120_v6 = vadd.f32 0.5, %v2116_v10 }
 0x1e0   :  { %v2124_v14 = vmul.f32 %v3957_v35, %v2120_v6 }
 0x1f0   :  { %v2102_v5 = vpop.f32.mrf.mxu3 }
 0x1f1   :  { %v2103_v7 = vadd.f32 %v2102_v5, %v2090_v4 }
 0x1f3   :  { %v2109_v8 = vmul.f32 0.5, %v2103_v7 }
 0x1f5   :  { %3953 = vtanh.f32 %v2109_v8 }
 0x1f8   :  { %v2104_v11 = vpop.f32.mrf.mxu3 }
 0x1fb   :  { %v3954_v47 = vpop.eup %3953 }
 0x1fc   :  { %v2117_v12 = vmul.f32 0.5, %v3954_v47 }
 0x1fe   :  { %v2121_v13 = vadd.f32 0.5, %v2117_v12 }
 0x200   :  { %v2125_v60 = vmul.f32 %v3958_v15, %v2121_v13 }
 0x202   :  { %v2127_v16 = vpack.c.bf16 %v2125_v60, %v2124_v14 }
 0x204   :  { %2129 = vst [vmem:[#allocation13 + $0x8] sm:$0xff] %v2127_v16  ;;  %v2202_v0 = vunpack.c.l.b16 %v2127_v16  ;;  %v2203_v17 = vunpack.c.h.b16 %v2127_v16 }
 0x205   :  { %2468 = dma.vmem_to_hbm [thread:$0]  %s2464_s5, 256, %s2466_s15, [#allocation4]  }
 0x206   :  { %v2206_v18 = vpack.c.b16 %v2202_v0, %v2202_v0  ;;  %v2207_v19 = vpack.c.b16 %v2203_v17, %v2203_v17 }
 0x208   :  { %2438 = vmatmul.bf16.vlgmr.msra.gmra.mxu2 %v2206_v18  ;;  %2451 = vmatmul.bf16.vlgmr.msra.gmra.mxu3 %v2207_v19 }
 0x255   :  { %v2413_v20 = vpop.f32.mrf.mxu0  ;;  %v2426_v21 = vpop.f32.mrf.mxu1 }
 0x256   :  { %v2414_v26 = vadd.f32 %v3946_v24, %v2413_v20 }
 0x258   :  { %v2427_v28 = vadd.f32 %v2426_v21, %v2414_v26 }
 0x25d   :  { %v2415_v22 = vpop.f32.mrf.mxu0  ;;  %v2428_v23 = vpop.f32.mrf.mxu1 }
 0x28b   :  { %v2439_v29 = vpop.f32.mrf.mxu2  ;;  %v2452_v31 = vpop.f32.mrf.mxu3 }
 0x28c   :  { %v2440_v30 = vadd.f32 %v2439_v29, %v2427_v28 }
 0x28e   :  { %v2453_v32 = vadd.f32 %v2452_v31, %v2440_v30 }
 0x290   :  { %v2456_v34 = vpack.c.bf16 %v2453_v32, %v2453_v32 }
 0x292   :  { %2457 = vst [vmem:[#allocation14] sm:$0xf] %v2456_v34 }
 0x293   :  { %v2441_v36 = vpop.f32.mrf.mxu2  ;;  %v2454_v37 = vpop.f32.mrf.mxu3  ;;  %2479 = dma.vmem_to_hbm [thread:$0]  %s2475_s19, 64, %s2477_s20, [#allocation15]  }
 0x294   :  { %4159 = dma.done.wait [#allocation4], 256  }
 0x295   :  { %4160 = vsyncadd [#allocation4], 4294967040 }
 0x296   :  { %4161 = dma.done.wait [#allocation15], 64  }
 0x297   :  { %4162 = vsyncadd [#allocation15], 4294967232 }
 0x298   :  { %2488 = vsyncpa [#allocation3], 1 }
 0x299   :  { %2489 = vsyncpa [#allocation6], 1 }
 0x29a   :  { %2490 = vsyncpa [#allocation9], 1 }
 0x29b   :  { %2491 = vsyncpa [#allocation12], 1 }
 0x29c   :  { %2492 = vsyncpa [#allocation4], 1 }
 0x29d   :  { %2493 = vsyncpa [#allocation15], 1 }

</bundles_post_ra>
